<compile_context>
chip_gen: v5e
topology: v5e:2x2
jax: 0.10.0
libtpu: 0.0.40
codegen_flags: <defaults>
</compile_context>

<pallas_src>
import functools
import math

import jax
import jax.numpy as jnp
from jax.experimental import pallas as pl
from jax.experimental.pallas import tpu as pltpu

BN_EPS = 1e-5


def _round_up(v, m):
    return (v + m - 1) // m * m


def _pad2(a, rows, cols):
    return jnp.pad(a, ((0, rows - a.shape[0]), (0, cols - a.shape[1])))


def _vmem_physical_bytes():
    try:
        return int(pltpu.get_tpu_info().vmem_capacity_bytes)
    except Exception:
        return 64 * 1024 * 1024          # v7x per-TC: most conservative


def _vmem_estimate(tile_m, tile_k, n_pad, hp, cp):
    a_buf = 2 * tile_m * tile_k * 2                      # bf16 A, double buffered
    hw1_buf = 2 * n_pad * hp * 2                         # resident bf16 hw1 (assume 2 bufs)
    out_buf = 2 * tile_m * cp * 4                        # f32 output tile, double buffered
    weights = 2 * ((hp * hp + cp * hp) * 2 + (2 * hp + cp) * 4)   # w2/w3 bf16 + biases f32
    scratch = n_pad * hp * 2 + tile_m * hp * 4           # hw2 bf16 + f32 accumulator
    return a_buf + hw1_buf + out_buf + weights + scratch


def _plan(n, hidden_dim, num_classes, tile_m=None, tile_k=None, vmem_budget=None):
    """Pick tiles and padded sizes so the real VMEM footprint fits the budget."""
    hp = _round_up(hidden_dim, 128)
    cp = _round_up(num_classes, 128)
    if vmem_budget is None:
        vmem_budget = int(_vmem_physical_bytes() * 0.70)

    if tile_k is None:
        tile_k = min(512, _round_up(n, 128))
    tile_k = max(128, _round_up(tile_k, 128))
    if tile_m is None:
        tile_m = min(256, _round_up(n, 16))
    tile_m = max(16, _round_up(tile_m, 16))

    def npad(tm, tk):
        return _round_up(n, tm * tk // math.gcd(tm, tk))

    # Shrink the K tile first (A-buffer bytes), then the row tile, until we fit.
    while (_vmem_estimate(tile_m, tile_k, npad(tile_m, tile_k), hp, cp) > vmem_budget
           and tile_k > 128):
        tile_k = max(128, _round_up(tile_k // 2, 128))
    while (_vmem_estimate(tile_m, tile_k, npad(tile_m, tile_k), hp, cp) > vmem_budget
           and tile_m > 16):
        tile_m = max(16, _round_up(tile_m // 2, 16))

    return tile_m, tile_k, npad(tile_m, tile_k), hp, cp


def prepare_adjacency(nodeblocks, n_pad):
    """bf16-cast BEFORE padding; call once and reuse when nodeblocks are static."""
    return jnp.stack(
        [_pad2(jnp.asarray(adj).astype(jnp.bfloat16), n_pad, n_pad) for adj in nodeblocks]
    )


# ---------------------------------------------------------------------------
# Fused kernel: GraphConv1(+ReLU) -> (h1 @ W2 per tile) -> GraphConv2 -> Linear
# grid = (phase, row_tile, k_tile); phase 0 builds hw2, phase 1 builds the output.
# ---------------------------------------------------------------------------
def fused_kernel(adj_ref, hw1_ref, b1_ref, w2_ref, b2_ref, w3_ref, b3_ref,
                 o_ref, hw2_ref, acc_ref, *, tile_m, tile_k):
    p = pl.program_id(0)          # 0: first graph layer, 1: second graph layer + Linear
    i = pl.program_id(1)          # row tile of A / output
    k = pl.program_id(2)          # contraction tile over graph nodes
    nk = pl.num_programs(2)

    @pl.when(k == 0)
    def _():
        acc_ref[...] = jnp.zeros_like(acc_ref)

    k0 = pl.multiple_of(k * tile_k, tile_k)

    # --- A_tile @ (H W): bf16 operands, f32 accumulation -----------------------
    @pl.when(p == 0)
    def _():
        acc_ref[...] += jnp.dot(adj_ref[...], hw1_ref[pl.ds(k0, tile_k), :],
                                preferred_element_type=jnp.float32)

    @pl.when(p == 1)
    def _():
        acc_ref[...] += jnp.dot(adj_ref[...], hw2_ref[pl.ds(k0, tile_k), :],
                                preferred_element_type=jnp.float32)

    # --- row-tile epilogues -----------------------------------------------------
    @pl.when((p == 0) & (k == nk - 1))
    def _():
        # ReLU after the first graph layer, then pre-project with W2 so phase 1
        # only needs A @ hw2 (no serialized phase-entry matmul).
        h1 = jnp.maximum(acc_ref[...] + b1_ref[...], 0.0)
        r0 = pl.multiple_of(i * tile_m, tile_m)
        hw2_ref[pl.ds(r0, tile_m), :] = jnp.dot(
            h1.astype(jnp.bfloat16), w2_ref[...],
            preferred_element_type=jnp.float32).astype(jnp.bfloat16)
        # Note: o_ref is intentionally NOT written in phase 0; its block index is
        # constant here, so nothing is flushed to HBM before phase 1 overwrites it.

    @pl.when((p == 1) & (k == nk - 1))
    def _():
        h2 = (acc_ref[...] + b2_ref[...]).astype(jnp.bfloat16)   # no activation here
        # nn.Linear: contract last dims of both operands (PyTorch [out, in] weight).
        out = jax.lax.dot_general(
            h2, w3_ref[...], (((1,), (1,)), ((), ())),
            preferred_element_type=jnp.float32) + b3_ref[...]
        o_ref[...] = out.astype(o_ref.dtype)


# ---------------------------------------------------------------------------
# pallas_call wrapper
# ---------------------------------------------------------------------------
def fused_forward(a, hw1, b1, w2, b2, w3, b3, *, n, c, n_pad, hp, cp, tile_m, tile_k):
    nt = n_pad // tile_m
    nk = n_pad // tile_k

    vmem_est = _vmem_estimate(tile_m, tile_k, n_pad, hp, cp)
    phys = _vmem_physical_bytes()
    vmem_limit = int(min(int(phys * 0.9), max(32 * 1024 * 1024, int(vmem_est * 1.5))))

    flops = (2 * 2 * n_pad * n_pad * hp       # two A @ (HW) products
             + 2 * n_pad * hp * hp            # h1 @ W2
             + 2 * n_pad * hp * cp)           # Linear
    bytes_accessed = (2 * n_pad * n_pad * 2   # two bf16 adjacencies
                      + n_pad * hp * 2        # hw1
                      + (hp * hp + cp * hp) * 2 + (2 * hp + cp) * 4
                      + n_pad * cp * 4)       # output

    out = pl.pallas_call(
        functools.partial(fused_kernel, tile_m=tile_m, tile_k=tile_k),
        out_shape=jax.ShapeDtypeStruct((n_pad, cp), jnp.float32),
        grid_spec=pltpu.PrefetchScalarGridSpec(
            num_scalar_prefetch=0,
            grid=(2, nt, nk),
            in_specs=[
                # adjacency block: (tile_m, tile_k) of nodeblock `p`
                pl.BlockSpec((None, tile_m, tile_k), lambda p, i, k: (p, i, k)),
                # resident blocks (constant index_map -> DMA'd once)
                pl.BlockSpec((n_pad, hp), lambda p, i, k: (0, 0)),   # hw1 = BN(x) @ W1
                pl.BlockSpec((1, hp), lambda p, i, k: (0, 0)),       # b1
                pl.BlockSpec((hp, hp), lambda p, i, k: (0, 0)),      # w2 (bf16)
                pl.BlockSpec((1, hp), lambda p, i, k: (0, 0)),       # b2
                pl.BlockSpec((cp, hp), lambda p, i, k: (0, 0)),      # w3 (bf16, [out,in])
                pl.BlockSpec((1, cp), lambda p, i, k: (0, 0)),       # b3
            ],
            # phase 0 parks on block 0; phase 1 writes the real row tiles.
            out_specs=pl.BlockSpec((tile_m, cp), lambda p, i, k: (i * p, 0)),
            scratch_shapes=[
                pltpu.VMEM((n_pad, hp), jnp.bfloat16),   # hw2 = relu(A hw1 + b1) @ W2
                pltpu.VMEM((tile_m, hp), jnp.float32),   # f32 accumulator for K-tiling
            ],
        ),
        compiler_params=pltpu.CompilerParams(
            dimension_semantics=("arbitrary", "arbitrary", "arbitrary"),
            vmem_limit_bytes=vmem_limit,
        ),
        cost_estimate=pl.CostEstimate(flops=flops, transcendentals=0,
                                      bytes_accessed=bytes_accessed),
    )(a, hw1, b1, w2, b2, w3, b3)

    return out[:n, :c]


# ---------------------------------------------------------------------------
# Custom module (mirrors the PyTorch forward; arch = [graph, graph, linear])
# ---------------------------------------------------------------------------
class CustomPallas:
    def __init__(self, features_dim, hidden_dim, num_classes, num_layers, key):
        assert num_layers == 3, "fused kernel is specialized for the 3-layer arch"
        self.num_layers = num_layers
        self.features_dim = features_dim
        self.hidden_dim = hidden_dim
        self.num_classes = num_classes
        k0, k1, k2, k3, k4, k5 = jax.random.split(key, 6)
        s = 0.1
        # ('graph', W[in,out], b[out]) or ('linear', W[out,in], b[out])
        self.layers = [
            ("graph", s * jax.random.normal(k0, (features_dim, hidden_dim), jnp.float32),
                      s * jax.random.normal(k1, (hidden_dim,), jnp.float32)),
            ("graph", s * jax.random.normal(k2, (hidden_dim, hidden_dim), jnp.float32),
                      s * jax.random.normal(k3, (hidden_dim,), jnp.float32)),
            ("linear", s * jax.random.normal(k4, (num_classes, hidden_dim), jnp.float32),
                       s * jax.random.normal(k5, (num_classes,), jnp.float32)),
        ]

    def plan(self, n, tile_m=None, tile_k=None):
        return _plan(n, self.hidden_dim, self.num_classes, tile_m, tile_k)

    def prepare_adjacency(self, nodeblocks, n, tile_m=None, tile_k=None):
        """Hoistable adjacency prep (bf16 cast + pad); reuse across forward calls."""
        _, _, n_pad, _, _ = self.plan(n, tile_m, tile_k)
        return prepare_adjacency(nodeblocks, n_pad)

    def forward(self, nodeblocks, x, *, tile_m=None, tile_k=None):
        # dropout p=0 -> identity; activation = ReLU.
        n, _ = x.shape
        tile_m, tile_k, n_pad, hp, cp = self.plan(n, tile_m, tile_k)
        (_, w1, b1), (_, w2, b2), (_, w3, b3) = self.layers
        h = w1.shape[1]
        c = w3.shape[0]

        # BatchNorm1d(affine=False), training mode (biased batch stats) — cheap
        # column reduce, hoisted out of the kernel.
        mean = jnp.mean(x, axis=0, keepdims=True)
        var = jnp.mean((x - mean) ** 2, axis=0, keepdims=True)
        xbn = (x - mean) * jax.lax.rsqrt(var + BN_EPS)

        # First GraphConv pre-projection (tiny N*F*H matmul): bf16 operands,
        # f32 accumulation, stored bf16 for the kernel's A @ hw1 stream.
        hw1 = jnp.dot(xbn.astype(jnp.bfloat16), w1.astype(jnp.bfloat16),
                      preferred_element_type=jnp.float32).astype(jnp.bfloat16)
        hw1 = _pad2(hw1, n_pad, hp)

        if isinstance(nodeblocks, (list, tuple)):
            assert len(nodeblocks) == 2
            a = prepare_adjacency(nodeblocks, n_pad)
        else:  # pre-prepared via prepare_adjacency (hoisted out of the call path)
            a = nodeblocks
            assert a.ndim == 3 and a.shape[1] == n_pad and a.shape[2] == n_pad, a.shape

        # Zero padding is mathematically inert: padded feature/class columns see
        # zero weights; padded rows are annihilated by the exactly-zero padded
        # adjacency columns (bf16 zero is exact).
        b1p = jnp.pad(b1, (0, hp - h)).reshape(1, hp).astype(jnp.float32)
        w2p = _pad2(w2.astype(jnp.bfloat16), hp, hp)
        b2p = jnp.pad(b2, (0, hp - h)).reshape(1, hp).astype(jnp.float32)
        w3p = _pad2(w3.astype(jnp.bfloat16), cp, hp)     # PyTorch [out, in] layout kept
        b3p = jnp.pad(b3, (0, cp - c)).reshape(1, cp).astype(jnp.float32)

        return fused_forward(a, hw1, b1p, w2p, b2p, w3p, b3p,
                             n=n, c=c, n_pad=n_pad, hp=hp, cp=cp,
                             tile_m=tile_m, tile_k=tile_k)


# ---------------------------------------------------------------------------
# Pure-JAX reference (sanity check)
# ---------------------------------------------------------------------------
def reference_forward(model, nodeblocks, x):
    mean = jnp.mean(x, axis=0, keepdims=True)
    var = jnp.mean((x - mean) ** 2, axis=0, keepdims=True)
    hcur = (x - mean) / jnp.sqrt(var + BN_EPS)
    i = 0
    for kind, w, b in model.layers:
        if kind == "linear":
            hcur = hcur @ w.T + b
            if i < model.num_layers - 1:
                hcur = jnp.maximum(hcur, 0.0)
        else:
            hcur = nodeblocks[i] @ (hcur @ w) + b
            i += 1
            if i < model.num_layers - 1:
                hcur = jnp.maximum(hcur, 0.0)
    return hcur


if __name__ == "__main__":
    key = jax.random.PRNGKey(0)
    k_x, k_adj0, k_adj1, k_params = jax.random.split(key, 4)

    N = 256           # number of graph nodes
    F = 48            # features_dim
    H = 96            # hidden_dim
    C = 10            # num_classes

    x = jax.random.normal(k_x, (N, F), jnp.float32)

    def make_adj(k):
        a = (jax.random.uniform(k, (N, N)) < 0.2).astype(jnp.float32)
        a = jnp.minimum(a + jnp.eye(N, dtype=jnp.float32), 1.0)   # self loops
        return a / jnp.sum(a, axis=1, keepdims=True)              # row-normalize

    nodeblocks = [make_adj(k_adj0), make_adj(k_adj1)]

    model = CustomPallas(features_dim=F, hidden_dim=H, num_classes=C,
                         num_layers=3, key=k_params)

    # Adjacency pad + bf16 cast hoisted out of the per-call path (done once here).
    a_prepared = model.prepare_adjacency(nodeblocks, N, tile_m=128, tile_k=128)

    # tile_m=tile_k=128 -> grid=(2 phases, 2 row tiles, 2 k tiles): exercises the
    # full tiled A stream, the K accumulator and the hw2 hand-off between phases.
    out = model.forward(a_prepared, x, tile_m=128, tile_k=128)
    out = jax.block_until_ready(out)

    ref = reference_forward(model, nodeblocks, x)
    assert out.shape == (N, C), out.shape
    err = float(jnp.max(jnp.abs(out - ref)))
    assert jnp.allclose(out, ref, rtol=5e-2, atol=5e-2), err

    print("KERNEL_OK")
</pallas_src>

<mosaic_0001>
module attributes {stable_mosaic.version = 11 : i64} {
  func.func @fused_kernel(%arg0: i32, %arg1: i32, %arg2: i32, %arg3: memref<1x128x128xbf16, #tpu.memory_space<vmem>>, %arg4: memref<256x128xbf16, #tpu.memory_space<vmem>>, %arg5: memref<1x128xf32, #tpu.memory_space<vmem>>, %arg6: memref<128x128xbf16, #tpu.memory_space<vmem>>, %arg7: memref<1x128xf32, #tpu.memory_space<vmem>>, %arg8: memref<128x128xbf16, #tpu.memory_space<vmem>>, %arg9: memref<1x128xf32, #tpu.memory_space<vmem>>, %arg10: memref<128x128xf32, #tpu.memory_space<vmem>>, %arg11: memref<256x128xbf16, #tpu.memory_space<vmem>>, %arg12: memref<128x128xf32, #tpu.memory_space<vmem>>) attributes {dimension_semantics = [#tpu.dimension_semantics<arbitrary>, #tpu.dimension_semantics<arbitrary>, #tpu.dimension_semantics<arbitrary>], iteration_bounds = array<i64: 2, 2, 2>, scalar_prefetch = 0 : i64, scratch_operands = 2 : i64, tpu.core_type = #tpu.core_type<tc>, window_params = [{transform_indices = @transform_0, window_bounds = array<i64: 1, 128, 128>}, {pipeline_mode = #tpu.pipeline_mode<synchronous>, transform_indices = @transform_1, window_bounds = array<i64: 256, 128>}, {pipeline_mode = #tpu.pipeline_mode<synchronous>, transform_indices = @transform_2, window_bounds = array<i64: 1, 128>}, {pipeline_mode = #tpu.pipeline_mode<synchronous>, transform_indices = @transform_3, window_bounds = array<i64: 128, 128>}, {pipeline_mode = #tpu.pipeline_mode<synchronous>, transform_indices = @transform_4, window_bounds = array<i64: 1, 128>}, {pipeline_mode = #tpu.pipeline_mode<synchronous>, transform_indices = @transform_5, window_bounds = array<i64: 128, 128>}, {pipeline_mode = #tpu.pipeline_mode<synchronous>, transform_indices = @transform_6, window_bounds = array<i64: 1, 128>}, {transform_indices = @transform_7, window_bounds = array<i64: 128, 128>}]} {
    %c0_i32 = arith.constant 0 : i32
    %0 = arith.cmpi eq, %arg2, %c0_i32 : i32
    %1 = arith.extui %0 : i1 to i32
    %c0_i32_0 = arith.constant 0 : i32
    %2 = arith.cmpi ne, %1, %c0_i32_0 : i32
    scf.if %2 {
      %cst = arith.constant 0.000000e+00 : f32
      %21 = vector.broadcast %cst : f32 to vector<128x128xf32>
      %c0 = arith.constant 0 : index
      %c0_10 = arith.constant 0 : index
      %22 = vector.load %arg12[%c0, %c0_10] : memref<128x128xf32, #tpu.memory_space<vmem>>, vector<128x128xf32>
      tpu.vector_store %arg12[%c0, %c0_10], %21 {strides = array<i32>} : memref<128x128xf32, #tpu.memory_space<vmem>>, vector<128x128xf32>,
    } else {
    }
    %c128_i32 = arith.constant 128 : i32
    %3 = arith.muli %arg2, %c128_i32 : i32
    %4 = tpu.assume_multiple %3, 128 : i32
    %c0_i32_1 = arith.constant 0 : i32
    %5 = arith.cmpi eq, %arg0, %c0_i32_1 : i32
    %6 = arith.extui %5 : i1 to i32
    %c0_i32_2 = arith.constant 0 : i32
    %7 = arith.cmpi ne, %6, %c0_i32_2 : i32
    scf.if %7 {
      %c0 = arith.constant 0 : index
      %c0_10 = arith.constant 0 : index
      %21 = vector.load %arg12[%c0, %c0_10] : memref<128x128xf32, #tpu.memory_space<vmem>>, vector<128x128xf32>
      %c0_11 = arith.constant 0 : index
      %c0_12 = arith.constant 0 : index
      %c0_13 = arith.constant 0 : index
      %22 = vector.load %arg3[%c0_11, %c0_12, %c0_13] : memref<1x128x128xbf16, #tpu.memory_space<vmem>>, vector<1x128x128xbf16>
      %23 = vector.shape_cast %22 : vector<1x128x128xbf16> to vector<128x128xbf16>
      %24 = arith.index_cast %4 : i32 to index
      %c0_14 = arith.constant 0 : index
      %25 = vector.load %arg4[%24, %c0_14] : memref<256x128xbf16, #tpu.memory_space<vmem>>, vector<128x128xbf16>
      %cst = arith.constant dense<0.000000e+00> : vector<128x128xf32>
      %26 = tpu.matmul %23, %25, %cst {dimension_numbers = #tpu.dot_dimension_numbers<[1], [0], [0], [1], [0, 0, 1, 1], [], []>} : vector<128x128xbf16>, vector<128x128xbf16>, vector<128x128xf32> -> vector<128x128xf32>
      %27 = arith.addf %21, %26 : vector<128x128xf32>
      %c0_15 = arith.constant 0 : index
      %c0_16 = arith.constant 0 : index
      %28 = vector.load %arg12[%c0_15, %c0_16] : memref<128x128xf32, #tpu.memory_space<vmem>>, vector<128x128xf32>
      tpu.vector_store %arg12[%c0_15, %c0_16], %27 {strides = array<i32>} : memref<128x128xf32, #tpu.memory_space<vmem>>, vector<128x128xf32>,
    } else {
    }
    %c1_i32 = arith.constant 1 : i32
    %8 = arith.cmpi eq, %arg0, %c1_i32 : i32
    %9 = arith.extui %8 : i1 to i32
    %c0_i32_3 = arith.constant 0 : i32
    %10 = arith.cmpi ne, %9, %c0_i32_3 : i32
    scf.if %10 {
      %c0 = arith.constant 0 : index
      %c0_10 = arith.constant 0 : index
      %21 = vector.load %arg12[%c0, %c0_10] : memref<128x128xf32, #tpu.memory_space<vmem>>, vector<128x128xf32>
      %c0_11 = arith.constant 0 : index
      %c0_12 = arith.constant 0 : index
      %c0_13 = arith.constant 0 : index
      %22 = vector.load %arg3[%c0_11, %c0_12, %c0_13] : memref<1x128x128xbf16, #tpu.memory_space<vmem>>, vector<1x128x128xbf16>
      %23 = vector.shape_cast %22 : vector<1x128x128xbf16> to vector<128x128xbf16>
      %24 = arith.index_cast %4 : i32 to index
      %c0_14 = arith.constant 0 : index
      %25 = vector.load %arg11[%24, %c0_14] : memref<256x128xbf16, #tpu.memory_space<vmem>>, vector<128x128xbf16>
      %cst = arith.constant dense<0.000000e+00> : vector<128x128xf32>
      %26 = tpu.matmul %23, %25, %cst {dimension_numbers = #tpu.dot_dimension_numbers<[1], [0], [0], [1], [0, 0, 1, 1], [], []>} : vector<128x128xbf16>, vector<128x128xbf16>, vector<128x128xf32> -> vector<128x128xf32>
      %27 = arith.addf %21, %26 : vector<128x128xf32>
      %c0_15 = arith.constant 0 : index
      %c0_16 = arith.constant 0 : index
      %28 = vector.load %arg12[%c0_15, %c0_16] : memref<128x128xf32, #tpu.memory_space<vmem>>, vector<128x128xf32>
      tpu.vector_store %arg12[%c0_15, %c0_16], %27 {strides = array<i32>} : memref<128x128xf32, #tpu.memory_space<vmem>>, vector<128x128xf32>,
    } else {
    }
    %c0_i32_4 = arith.constant 0 : i32
    %11 = arith.cmpi eq, %arg0, %c0_i32_4 : i32
    %c1_i32_5 = arith.constant 1 : i32
    %12 = arith.cmpi eq, %arg2, %c1_i32_5 : i32
    %13 = arith.andi %11, %12 : i1
    %14 = arith.extui %13 : i1 to i32
    %c0_i32_6 = arith.constant 0 : i32
    %15 = arith.cmpi ne, %14, %c0_i32_6 : i32
    scf.if %15 {
      %c0 = arith.constant 0 : index
      %c0_10 = arith.constant 0 : index
      %21 = vector.load %arg12[%c0, %c0_10] : memref<128x128xf32, #tpu.memory_space<vmem>>, vector<128x128xf32>
      %c0_11 = arith.constant 0 : index
      %c0_12 = arith.constant 0 : index
      %22 = vector.load %arg5[%c0_11, %c0_12] : memref<1x128xf32, #tpu.memory_space<vmem>>, vector<1x128xf32>
      %23 = vector.broadcast %22 : vector<1x128xf32> to vector<128x128xf32>
      %24 = arith.addf %21, %23 : vector<128x128xf32>
      %cst = arith.constant 0.000000e+00 : f32
      %25 = vector.broadcast %cst : f32 to vector<128x128xf32>
      %26 = arith.maximumf %24, %25 : vector<128x128xf32>
      %c128_i32_13 = arith.constant 128 : i32
      %27 = arith.muli %arg1, %c128_i32_13 : i32
      %28 = tpu.assume_multiple %27, 128 : i32
      %29 = arith.truncf %26 : vector<128x128xf32> to vector<128x128xbf16>
      %c0_14 = arith.constant 0 : index
      %c0_15 = arith.constant 0 : index
      %30 = vector.load %arg6[%c0_14, %c0_15] : memref<128x128xbf16, #tpu.memory_space<vmem>>, vector<128x128xbf16>
      %cst_16 = arith.constant dense<0.000000e+00> : vector<128x128xf32>
      %31 = tpu.matmul %29, %30, %cst_16 {dimension_numbers = #tpu.dot_dimension_numbers<[1], [0], [0], [1], [0, 0, 1, 1], [], []>} : vector<128x128xbf16>, vector<128x128xbf16>, vector<128x128xf32> -> vector<128x128xf32>
      %32 = arith.truncf %31 : vector<128x128xf32> to vector<128x128xbf16>
      %33 = arith.index_cast %28 : i32 to index
      %c0_17 = arith.constant 0 : index
      %34 = vector.load %arg11[%33, %c0_17] : memref<256x128xbf16, #tpu.memory_space<vmem>>, vector<128x128xbf16>
      tpu.vector_store %arg11[%33, %c0_17], %32 {strides = array<i32>} : memref<256x128xbf16, #tpu.memory_space<vmem>>, vector<128x128xbf16>,
    } else {
    }
    %c1_i32_7 = arith.constant 1 : i32
    %16 = arith.cmpi eq, %arg0, %c1_i32_7 : i32
    %c1_i32_8 = arith.constant 1 : i32
    %17 = arith.cmpi eq, %arg2, %c1_i32_8 : i32
    %18 = arith.andi %16, %17 : i1
    %19 = arith.extui %18 : i1 to i32
    %c0_i32_9 = arith.constant 0 : i32
    %20 = arith.cmpi ne, %19, %c0_i32_9 : i32
    scf.if %20 {
      %c0 = arith.constant 0 : index
      %c0_10 = arith.constant 0 : index
      %21 = vector.load %arg12[%c0, %c0_10] : memref<128x128xf32, #tpu.memory_space<vmem>>, vector<128x128xf32>
      %c0_11 = arith.constant 0 : index
      %c0_12 = arith.constant 0 : index
      %22 = vector.load %arg7[%c0_11, %c0_12] : memref<1x128xf32, #tpu.memory_space<vmem>>, vector<1x128xf32>
      %23 = vector.broadcast %22 : vector<1x128xf32> to vector<128x128xf32>
      %24 = arith.addf %21, %23 : vector<128x128xf32>
      %25 = arith.truncf %24 : vector<128x128xf32> to vector<128x128xbf16>
      %c0_13 = arith.constant 0 : index
      %c0_14 = arith.constant 0 : index
      %26 = vector.load %arg8[%c0_13, %c0_14] : memref<128x128xbf16, #tpu.memory_space<vmem>>, vector<128x128xbf16>
      %cst = arith.constant dense<0.000000e+00> : vector<128x128xf32>
      %27 = tpu.matmul %25, %26, %cst {dimension_numbers = #tpu.dot_dimension_numbers<[1], [1], [0], [0], [0, 0, 1, 0], [], []>} : vector<128x128xbf16>, vector<128x128xbf16>, vector<128x128xf32> -> vector<128x128xf32>
      %c0_15 = arith.constant 0 : index
      %c0_16 = arith.constant 0 : index
      %28 = vector.load %arg9[%c0_15, %c0_16] : memref<1x128xf32, #tpu.memory_space<vmem>>, vector<1x128xf32>
      %29 = vector.broadcast %28 : vector<1x128xf32> to vector<128x128xf32>
      %30 = arith.addf %27, %29 : vector<128x128xf32>
      %c0_17 = arith.constant 0 : index
      %c0_18 = arith.constant 0 : index
      %31 = vector.load %arg10[%c0_17, %c0_18] : memref<128x128xf32, #tpu.memory_space<vmem>>, vector<128x128xf32>
      tpu.vector_store %arg10[%c0_17, %c0_18], %30 {strides = array<i32>} : memref<128x128xf32, #tpu.memory_space<vmem>>, vector<128x128xf32>,
    } else {
    }
    return
  }
  func.func @transform_0(%arg0: i32, %arg1: i32, %arg2: i32) -> (i32, i32, i32) {
    %c0_i32 = arith.constant 0 : i32
    return %arg0, %arg1, %arg2 : i32, i32, i32
  }
  func.func @transform_1(%arg0: i32, %arg1: i32, %arg2: i32) -> (i32, i32) {
    %c0_i32 = arith.constant 0 : i32
    %c0_i32_0 = arith.constant 0 : i32
    %c0_i32_1 = arith.constant 0 : i32
    return %c0_i32, %c0_i32_0 : i32, i32
  }
  func.func @transform_2(%arg0: i32, %arg1: i32, %arg2: i32) -> (i32, i32) {
    %c0_i32 = arith.constant 0 : i32
    %c0_i32_0 = arith.constant 0 : i32
    %c0_i32_1 = arith.constant 0 : i32
    return %c0_i32, %c0_i32_0 : i32, i32
  }
  func.func @transform_3(%arg0: i32, %arg1: i32, %arg2: i32) -> (i32, i32) {
    %c0_i32 = arith.constant 0 : i32
    %c0_i32_0 = arith.constant 0 : i32
    %c0_i32_1 = arith.constant 0 : i32
    return %c0_i32, %c0_i32_0 : i32, i32
  }
  func.func @transform_4(%arg0: i32, %arg1: i32, %arg2: i32) -> (i32, i32) {
    %c0_i32 = arith.constant 0 : i32
    %c0_i32_0 = arith.constant 0 : i32
    %c0_i32_1 = arith.constant 0 : i32
    return %c0_i32, %c0_i32_0 : i32, i32
  }
  func.func @transform_5(%arg0: i32, %arg1: i32, %arg2: i32) -> (i32, i32) {
    %c0_i32 = arith.constant 0 : i32
    %c0_i32_0 = arith.constant 0 : i32
    %c0_i32_1 = arith.constant 0 : i32
    return %c0_i32, %c0_i32_0 : i32, i32
  }
  func.func @transform_6(%arg0: i32, %arg1: i32, %arg2: i32) -> (i32, i32) {
    %c0_i32 = arith.constant 0 : i32
    %c0_i32_0 = arith.constant 0 : i32
    %c0_i32_1 = arith.constant 0 : i32
    return %c0_i32, %c0_i32_0 : i32, i32
  }
  func.func @transform_7(%arg0: i32, %arg1: i32, %arg2: i32) -> (i32, i32) {
    %0 = arith.muli %arg1, %arg0 : i32
    %c0_i32 = arith.constant 0 : i32
    %c0_i32_0 = arith.constant 0 : i32
    return %0, %c0_i32 : i32, i32
  }
}

</mosaic_0001>

<bundles_post_ra>
// kernel: tpu_custom_call.1
= control target key start
LH: loop header
LB: loop body
LE: loop exit
PB: predicated region body
PF: predicated region fallthrough
CT: control target
= control target key end

     0   :  { %s2669_s0 = inlined_call_operand.hbm [shape: bf16[2,256,256], index: 0, kind: input, shape index: {}]   ;;  %s2670_s1 = inlined_call_operand.hbm [shape: bf16[256,128], index: 1, kind: input, shape index: {}]   ;;  %s2671_s2 = inlined_call_operand.vmem [shape: f32[1,128], index: 2, kind: input, shape index: {}]   ;;  %s2672_s3 = inlined_call_operand.hbm [shape: bf16[128,128], index: 3, kind: input, shape index: {}]   ;;  %s2673_s4 = inlined_call_operand.vmem [shape: f32[1,128], index: 4, kind: input, shape index: {}]   ;;  %s2674_s5 = inlined_call_operand.hbm [shape: bf16[128,128], index: 5, kind: input, shape index: {}]   ;;  %s2675_s6 = inlined_call_operand.vmem [shape: f32[1,128], index: 6, kind: input, shape index: {}]   ;;  %s2676_s7 = inlined_call_operand.hbm [shape: f32[256,128], index: 7, kind: output, shape index: {}]  }
   0x1   :  { %2696 = sst [smem:[#allocation29_spill]] %s2670_s1 }
   0x2   :  { %2697 = sst [smem:[#allocation30_spill]] %s2671_s2 }
   0x3   :  { %2698 = sst [smem:[#allocation31_spill]] %s2672_s3 }
   0x4   :  { %2699 = sst [smem:[#allocation32_spill]] %s2673_s4 }
   0x5   :  { %2700 = sst [smem:[#allocation33_spill]] %s2674_s5 }
   0x6   :  { %2701 = sst [smem:[#allocation34_spill]] %s2675_s6 }
   0x7   :  { %2702 = sst [smem:[#allocation35_spill]] %s2676_s7 }
   0x8   :  { %12 = vsyncpa [#allocation5], 0 }
   0x9   :  { %14 = vsyncpa [#allocation5 + $0x1], 0 }
   0xa   :  { %15 = vsyncpa [#allocation8], 0 }
   0xb   :  { %16 = vsyncpa [#allocation11], 0 }
   0xc   :  { %17 = vsyncpa [#allocation6], 0 }
   0xd   :  { %19 = vsyncpa [#allocation6 + $0x1], 0  ;;  %s2301_s24 = smov 0   ;;  %s2303_s25 = smov 0  }
   0xe   :  { %s2305_s26 = smov 0   ;;  %s2307_s27 = smov 0  }
   0xf   :  { %s2309_s28 = smov 0   ;;  %s2311_s29 = smov 0  }
  0x10   :  { %s2313_s30 = smov 0   ;;  %s2315_s8 = smov 0  }
  0x11   :  { %s2317_s9 = smov 0   ;;  %s2319_s10 = smov 0  }
  0x12   :  { %s2321_s11 = smov 0   ;;  %s2323_s12 = smov 0  }
  0x13   :  { %s2325_s13 = smov 0  }
  0x14 LB: > { %2703 = sst [smem:[#allocation17_spill]] %s2202_s24  ;;  %s1410_s14 = sadd.s32 4294967295, %s2250_s13   ;;  %s2250_s13 = sphi %s2325_s13, %s25_s13   ;;  %s2246_s12 = sphi %s2323_s12, %s2770_s12   ;;  %s2242_s11 = sphi %s2321_s11, %s2769_s11   ;;  %s2238_s10 = sphi %s2319_s10, %s2768_s10   ;;  %s2234_s9 = sphi %s2317_s9, %s2767_s9   ;;  %s2230_s8 = sphi %s2315_s8, %s2758_s8   ;;  %s2226_s30 = sphi %s2313_s30, %s2766_s30   ;;  %s2222_s29 = sphi %s2311_s29, %s2765_s29   ;;  %s2218_s28 = sphi %s2309_s28, %s2764_s28   ;;  %s2214_s27 = sphi %s2307_s27, %s2756_s27   ;;  %s2210_s26 = sphi %s2305_s26, %s2763_s26   ;;  %s2206_s25 = sphi %s2303_s25, %s2762_s25   ;;  %s2202_s24 = sphi %s2301_s24, %s2761_s24  }
  0x15   : > { %2704 = sst [smem:[#allocation18_spill]] %s2206_s25  ;;  %s1411_s15 = sadd.s32 4294967294, %s2250_s13  }
  0x16   : > { %2705 = sst [smem:[#allocation19_spill]] %s2218_s28  ;;  %p68_p0 = scmp.ne.s32.totalorder %s2218_s28, %s2214_s27 }
  0x17   : > { %2706 = sst [smem:[#allocation20_spill]] %s2226_s30  ;;  %p2367_p1 = scmp.eq.s32.totalorder %s1410_s14, 0 }
  0x18   : > { %2707 = sst [smem:[#allocation21_spill]] %s2230_s8  ;;  %p219_p2 = scmp.ne.s32.totalorder %s2210_s26, %s2206_s25 }
  0x19   : > { %2708 = sst [smem:[#allocation22_spill]] %s2234_s9  ;;  %p2376_p3 = por %p2367_p1, %p68_p0 }
  0x1a   : > { %2709 = sst [smem:[#allocation23_spill]] %s2242_s11  ;;  %p220_p4 = scmp.eq.s32.totalorder %s1410_s14, 7 }
  0x1b   : > { %s2710_s16 = scalar_select %p2367_p1, 1, 0 }
  0x1c   : > { %s2712_s18 = scalar_select %p2376_p3, 1, 0 }
  0x1d   : > { %2711 = sst [smem:[#allocation24_spill]] %s2710_s16  ;;  %p225_p5 = scmp.ne.s32.totalorder %s2206_s25, %s2202_s24 }
  0x1e   : > { %2713 = sst [smem:[#allocation25_spill]] %s2712_s18  ;;  %p226_p6 = scmp.eq.s32.totalorder %s1411_s15, 7 }
  0x1f   : > { %p2382_p7 = por %p220_p4, %p219_p2  ;;  %p1412_p8 = scmp.ge.s32.totalorder %s2250_s13, 1 }
  0x20   : > { %p2387_p9 = por %p226_p6, %p225_p5  ;;  %p233_p10 = scmp.lt.s32.totalorder %s2250_s13, 9 }
  0x21   : > { %s2714_s19 = scalar_select %p2382_p7, 1, 0 }
  0x22   : > { %s2716_s20 = scalar_select %p2387_p9, 1, 0 }
  0x23   : > { %2715 = sst [smem:[#allocation26_spill]] %s2714_s19  ;;  %p2395_p11 = pnand %p1412_p8, %p233_p10 }
  0x24   : > { %2717 = sst [smem:[#allocation27_spill]] %s2716_s20  ;;  %s2252_s14 = smov [#allocation7]  }
  0x25   : > { %s2718_s1 = sld [smem:[#allocation29_spill]]  ;;  %p1842_p12 = pneg %p2395_p11 }
  0x26   : > { %s246_s15 = sshll.u32 %s2252_s14, 4  ;;  %s2721_s3 = sld [smem:[#allocation31_spill]]  ;;  %s247_s15 = int_to_ptr.vmem [resolvable:$true] %s246_s15 }
  0x27   : > { %p2403_p13 = pnand %p1842_p12, %p2367_p1  ;;  %s2682_s22 = smov 64  }
  0x28   : > { %s2255_s14 = smov [#allocation9]   ;;  %s2722_s5 = sld [smem:[#allocation33_spill]] }
  0x29   : > { %s263_s7 = sshll.u32 %s2255_s14, 4  ;;  %s37_s14 = sadd.s32 1, %s2238_s10  ;;  %s264_s7 = int_to_ptr.vmem [resolvable:$true] %s263_s7 }
  0x2a   : > { %p38_p0 = scmp.ge.s32.totalorder %s37_s14, 2  ;;  %s40_s24 = sadd.s32 1, %s2242_s11 }
  0x2b   : > { %s244_s23 = sshll.u32 %s2718_s1, 4  ;;  %s2683_s1 = smov 4   ;;  %s245_s23 = int_to_ptr.hbm [resolvable:$true] %s244_s23 }
  0x2c   : > { %s261_s21 = sshll.u32 %s2721_s3, 4  ;;  %s44_s20 = sadd.s32 1, %s2246_s12  ;;  %s262_s21 = int_to_ptr.hbm [resolvable:$true] %s261_s21 }
  0x2d   : > { %1845 = dma.hbm_to_vmem [thread:$0]  (!%p2403_p13), %s245_s23, 2048, %s247_s15, [#allocation8], %s2682_s22, %s2682_s22, %s2683_s1  }
  0x2e   : > { %s278_s19 = sshll.u32 %s2722_s5, 4  ;;  %s2256_s23 = smov [#allocation10]   ;;  %s279_s19 = int_to_ptr.hbm [resolvable:$true] %s278_s19 }
  0x2f   : > { %1848 = dma.hbm_to_vmem [thread:$0]  (!%p2403_p13), %s262_s21, 1024, %s264_s7, [#allocation8], %s2682_s22, %s2682_s22, %s2683_s1  }
  0x30   : > { %s280_s15 = sshll.u32 %s2256_s23, 4  ;;  %s2772_s14 = smov (%p38_p0, %s37_s14), 0  ;;  %s281_s15 = int_to_ptr.vmem [resolvable:$true] %s280_s15 }
  0x31   : > { %1851 = dma.hbm_to_vmem [thread:$0]  (!%p2403_p13), %s279_s19, 1024, %s281_s15, [#allocation11], %s2682_s22, %s2682_s22, %s2683_s1  }
  0x32   : > { %2723 = sst [smem:[#allocation28_spill]] %s2772_s14  ;;  %s2774_s24 = smov (!%p38_p0, %s40_s24), %s2242_s11 }
  0x33   : > { %s51_s7 = ssub.s32 %s2238_s10, %s2772_s14  ;;  %p62_p2 = scmp.ne.s32.totalorder %s2222_s29, %s2218_s28 }
  0x34   : > { %p42_p4 = scmp.ge.s32.totalorder %s2774_s24, 2  ;;  %p63_p5 = scmp.eq.s32.totalorder %s2250_s13, 0 }
  0x35   : > { %s204_s17 = smul.u32 %s2242_s11, %s2246_s12  ;;  %p1863_p6 = scmp.lt.s32.totalorder %s2250_s13, 8 }
  0x36   : > { %s2776_s24 = smov (%p42_p4, %s2774_s24), 0  ;;  %s2778_s20 = smov (!%p42_p4, %s44_s20), %s2246_s12 }
  0x37   : > { %s49_s19 = ssub.s32 %s2242_s11, %s2776_s24  ;;  %p2448_p8 = por %p63_p5, %p62_p2 }
  0x38   : > { %p46_p10 = scmp.ge.s32.totalorder %s2778_s20, 2  ;;  %s297_s23 = sand.u32 1, %s2222_s29  }
  0x39   : > { %s1417_s15 = sshll.u32 %s297_s23, 6  ;;  %s1633_s22 = sshll.u32 %s2242_s11, 5 }
  0x3a   : > { %s2780_s20 = smov (%p46_p10, %s2778_s20), 0  ;;  %s306_s14 = sadd.s32 %s2238_s10, %s1633_s22 }
  0x3b   : > { %s48_s1 = ssub.s32 %s2246_s12, %s2780_s20  ;;  %s205_s3 = smul.u32 %s2780_s20, %s2776_s24 }
  0x3c   : > { %s50_s5 = sor.u32 %s49_s19, %s48_s1  ;;  %s1420_s8 = sshll.u32 %s2246_s12, 6 }
  0x3d   : > { %s52_s6 = sor.u32 %s51_s7, %s50_s5  ;;  %s206_s4 = ssub.s32 %s204_s17, %s205_s3 }
  0x3e   : > { %p53_p12 = scmp.eq.s32.totalorder %s52_s6, 0  ;;  %p207_p13 = scmp.eq.s32.totalorder %s206_s4, 0 }
  0x3f   : > { %s301_s2 = scalar_lea.vmem [#allocation4], %s1417_s15  ;;  %s2725_s30 = sadd.s32 1, %s2222_s29 }
  0x40   : > { %s313_s9 = sshll.u32 %s301_s2, 4  ;;  %s2726_s16 = sadd.s32 1, %s2210_s26  ;;  %s314_s9 = int_to_ptr.vmem [resolvable:$true] %s313_s9 }
  0x41   : > { %s2465_s25 = scalar_select %p53_p12, %s2222_s29, %s2725_s30  }
  0x42   : > { %s2470_s18 = scalar_select %p207_p13, %s2210_s26, %s2726_s16  }
  0x43   : > { %s308_s11 = sadd.s32 %s1420_s8, %s306_s14  ;;  %p1853_p0 = pnand %p1863_p6, %p2448_p8 }
  0x44   : > { %s1421_s28 = sshll.u32 %s308_s11, 2  ;;  %s298_s6 = scalar_lea.sflag [#allocation5], %s297_s23 }
  0x45   : > { %s310_s3 = scalar_lea.hbm %s2669_s0, %s1421_s28  ;;  %s2257_s2 = smov 128  }
  0x46   : > { %s311_s4 = sshll.u32 %s310_s3, 4  ;;  %s2727_s22 = smov 4   ;;  %s312_s4 = int_to_ptr.hbm [resolvable:$true] %s311_s4 }
  0x47   : > { %s2728_s30 = smov 64   ;;  %325 = sbr.rel (%p2395_p11) target bundleno = 996 (0x3e4), region = 48 }
  0x48   : > { %1855 = dma.hbm_to_vmem [thread:$0]  (!%p1853_p0), %s312_s4, 1024, %s314_s9, %s298_s6, %s2257_s2, %s2728_s30, %s2727_s22  }
  0x49   : > { %s2729_s8 = sld [smem:[#allocation19_spill]] (!%p2395_p11) }
  0x4f   : > { %s327_s11 = sand.u32 1, %s2729_s8  }
  0x50   : > { %s1423_s14 = sshll.u32 %s327_s11, 6  ;;  %s328_s7 = scalar_lea.sflag [#allocation5], %s327_s11 }
  0x51   : > { %s2484_s17 = scalar_lea.vmem [#allocation4], %s1423_s14 }
  0x52   : > { %2185 = dma.done.wait (%p2376_p3), %s328_s7, 1024  }
  0x53   : > { %2187 = vsyncadd (%p2376_p3), %s328_s7, 4294966272 }
  0x54   : > { %2189 = dma.done.wait (%p2367_p1), [#allocation8], 3072  }
  0x55   : > { %2191 = vsyncadd (%p2367_p1), [#allocation8], 4294964224 }
  0x56   : > { %2193 = dma.done.wait (%p2367_p1), [#allocation11], 1024  }
  0x57   : > { %2195 = vsyncadd (%p2367_p1), [#allocation11], 4294966272  ;;  %s2732_s9 = sld [smem:[#allocation18_spill]] }
  0x58   : > { %s2733_s23 = sld [smem:[#allocation20_spill]] }
  0x5d   : > { %s375_s27 = sand.u32 1, %s2732_s9  }
  0x5e   : > { %s1427_s19 = sshll.u32 %s375_s27, 7  ;;  %p1428_p3 = scmp.ne.s32.totalorder %s2733_s23, 0 }
  0x5f   : > { %s2501_s21 = scalar_lea.vmem [#allocation12], %s1427_s19 }
  0x60   : > { %384 = sbr.rel (%p1428_p3) target bundleno = 118 (0x76), region = 68 }
  0x65   : > { %v2258_v0 = vmov 0.0  }
  0x66   : > { %385 = vst [vmem:[#allocation3 + $0x30] sm:$0xff] %v2258_v0 }
  0x67   : > { %386 = vst [vmem:[#allocation3] sm:$0xff] %v2258_v0 }
  0x68   : > { %387 = vst [vmem:[#allocation3 + $0x58] sm:$0xff] %v2258_v0 }
  0x69   : > { %388 = vst [vmem:[#allocation3 + $0x18] sm:$0xff] %v2258_v0 }
  0x6a   : > { %389 = vst [vmem:[#allocation3 + $0x50] sm:$0xff] %v2258_v0 }
  0x6b   : > { %390 = vst [vmem:[#allocation3 + $0x68] sm:$0xff] %v2258_v0 }
  0x6c   : > { %391 = vst [vmem:[#allocation3 + $0x8] sm:$0xff] %v2258_v0 }
  0x6d   : > { %392 = vst [vmem:[#allocation3 + $0x48] sm:$0xff] %v2258_v0 }
  0x6e   : > { %393 = vst [vmem:[#allocation3 + $0x40] sm:$0xff] %v2258_v0 }
  0x6f   : > { %394 = vst [vmem:[#allocation3 + $0x20] sm:$0xff] %v2258_v0 }
  0x70   : > { %395 = vst [vmem:[#allocation3 + $0x10] sm:$0xff] %v2258_v0 }
  0x71   : > { %396 = vst [vmem:[#allocation3 + $0x38] sm:$0xff] %v2258_v0 }
  0x72   : > { %397 = vst [vmem:[#allocation3 + $0x60] sm:$0xff] %v2258_v0 }
  0x73   : > { %398 = vst [vmem:[#allocation3 + $0x70] sm:$0xff] %v2258_v0 }
  0x74   : > { %399 = vst [vmem:[#allocation3 + $0x78] sm:$0xff] %v2258_v0 }
  0x75   : > { %400 = vst [vmem:[#allocation3 + $0x28] sm:$0xff] %v2258_v0 }
  0x76 PF: > { %s2734_s15 = sld [smem:[#allocation20_spill]] }
  0x77   : > { %s2735_s1 = sld [smem:[#allocation22_spill]] }
  0x7c   : > { %s1429_s5 = sshll.u32 %s2734_s15, 7 }
  0x7d   : > { %p402_p1 = scmp.eq.s32.totalorder %s2735_s1, 0  ;;  %p1430_p11 = scmp.ne.s32.totalorder %s2735_s1, 0 }
  0x7e   : > { %s438_s4 = sshra.s32 (!%p1430_p11), %s1429_s5, 3 }
  0x7f   : > { %405 = sbr.rel (%p1430_p11) target bundleno = 325 (0x145), region = 72  ;;  %s1431_s6 = sshll.u32 (!%p1430_p11), %s438_s4, 2 }
  0x80   : > { %s2509_s2 = scalar_lea.vmem (!%p1430_p11), [#allocation7], %s1431_s6 }
  0x84   : > { %v1649_v1 = vld [vmem:[%s2509_s2 + $0x38] sm:$0xff]  ;;  %v1648_v2 = vld [vmem:[%s2509_s2 + $0x30] sm:$0xff]  ;;  %v1647_v3 = vld [vmem:[%s2509_s2 + $0x28] sm:$0xff] }
  0x85   : > { %554 = vmatpush.bf16.msra.mxu0 %v1649_v1  ;;  %1730 = vmatpush.bf16.msra.mxu1 %v1649_v1  ;;  %v1646_v4 = vld [vmem:[%s2509_s2 + $0x20] sm:$0xff]  ;;  %v1645_v5 = vld [vmem:[%s2509_s2 + $0x18] sm:$0xff]  ;;  %v1644_v6 = vld [vmem:[%s2509_s2 + $0x10] sm:$0xff] }
  0x86   : > { %1731 = vmatpush.bf16.msra.mxu2 %v1649_v1  ;;  %1732 = vmatpush.bf16.msra.mxu3 %v1649_v1  ;;  %v1643_v7 = vld [vmem:[%s2509_s2 + $0x8] sm:$0xff]  ;;  %v1642_v8 = vld [vmem:[%s2509_s2] sm:$0xff]  ;;  %v1636_v10 = vld [vmem:[%s2484_s17 + $0x10] sm:$0xff] }
  0x87   : > { %v1634_v9 = vld [vmem:[%s2484_s17] sm:$0xff]  ;;  %v1640_v12 = vld [vmem:[%s2484_s17 + $0x30] sm:$0xff]  ;;  %v1635_v13 = vld [vmem:[%s2484_s17 + $0x8] sm:$0xff] }
  0x88   : > { %v1638_v11 = vld [vmem:[%s2484_s17 + $0x20] sm:$0xff]  ;;  %v1637_v14 = vld [vmem:[%s2484_s17 + $0x18] sm:$0xff]  ;;  %v1639_v15 = vld [vmem:[%s2484_s17 + $0x28] sm:$0xff] }
  0x89   : > { %555 = vmatpush.bf16.msra.mxu0 %v1648_v2  ;;  %1733 = vmatpush.bf16.msra.mxu1 %v1648_v2  ;;  %v1641_v16 = vld [vmem:[%s2484_s17 + $0x38] sm:$0xff]  ;;  %v406_v17 = vld [vmem:[#allocation3 + $0x30] sm:$0xff]  ;;  %v414_v23 = vld [vmem:[#allocation3 + $0x40] sm:$0xff] }
  0x8a   : > { %1734 = vmatpush.bf16.msra.mxu2 %v1648_v2  ;;  %1735 = vmatpush.bf16.msra.mxu3 %v1648_v2  ;;  %v410_v18 = vld [vmem:[#allocation3 + $0x50] sm:$0xff]  ;;  %v418_v24 = vld [vmem:[#allocation3 + $0x60] sm:$0xff]  ;;  %v411_v26 = vld [vmem:[#allocation3 + $0x68] sm:$0xff] }
  0x8b   : > { %v407_v25 = vld [vmem:[#allocation3] sm:$0xff]  ;;  %v419_v36 = vld [vmem:[#allocation3 + $0x70] sm:$0xff]  ;;  %v408_v37 = vld [vmem:[#allocation3 + $0x58] sm:$0xff] }
  0x8c   : > { %v415_v35 = vld [vmem:[#allocation3 + $0x20] sm:$0xff]  ;;  %v412_v38 = vld [vmem:[#allocation3 + $0x8] sm:$0xff]  ;;  %v416_v47 = vld [vmem:[#allocation3 + $0x10] sm:$0xff] }
  0x8d   : > { %556 = vmatpush.bf16.msra.mxu0 %v1647_v3  ;;  %1736 = vmatpush.bf16.msra.mxu1 %v1647_v3  ;;  %v420_v48 = vld [vmem:[#allocation3 + $0x78] sm:$0xff]  ;;  %v413_v50 = vld [vmem:[#allocation3 + $0x48] sm:$0xff] }
  0x8e   : > { %1737 = vmatpush.bf16.msra.mxu2 %v1647_v3  ;;  %1738 = vmatpush.bf16.msra.mxu3 %v1647_v3  ;;  %v409_v49 = vld [vmem:[#allocation3 + $0x18] sm:$0xff]  ;;  %v421_v60 = vld [vmem:[#allocation3 + $0x28] sm:$0xff] }
  0x8f   : > { %v417_v59 = vld [vmem:[#allocation3 + $0x38] sm:$0xff] }
  0x91   : > { %557 = vmatpush.bf16.msra.mxu0 %v1646_v4  ;;  %1739 = vmatpush.bf16.msra.mxu1 %v1646_v4 }
  0x92   : > { %1740 = vmatpush.bf16.msra.mxu2 %v1646_v4  ;;  %1741 = vmatpush.bf16.msra.mxu3 %v1646_v4 }
  0x95   : > { %558 = vmatpush.bf16.msra.mxu0 %v1645_v5  ;;  %1742 = vmatpush.bf16.msra.mxu1 %v1645_v5 }
  0x96   : > { %1743 = vmatpush.bf16.msra.mxu2 %v1645_v5  ;;  %1744 = vmatpush.bf16.msra.mxu3 %v1645_v5 }
  0x99   : > { %559 = vmatpush.bf16.msra.mxu0 %v1644_v6  ;;  %1745 = vmatpush.bf16.msra.mxu1 %v1644_v6 }
  0x9a   : > { %1746 = vmatpush.bf16.msra.mxu2 %v1644_v6  ;;  %1747 = vmatpush.bf16.msra.mxu3 %v1644_v6 }
  0x9d   : > { %560 = vmatpush.bf16.msra.mxu0 %v1643_v7  ;;  %1748 = vmatpush.bf16.msra.mxu1 %v1643_v7 }
  0x9e   : > { %1749 = vmatpush.bf16.msra.mxu2 %v1643_v7  ;;  %1750 = vmatpush.bf16.msra.mxu3 %v1643_v7 }
  0xa1   : > { %561 = vmatpush.bf16.msra.mxu0 %v1642_v8  ;;  %1751 = vmatpush.bf16.msra.mxu1 %v1642_v8 }
  0xa2   : > { %1752 = vmatpush.bf16.msra.mxu2 %v1642_v8  ;;  %1753 = vmatpush.bf16.msra.mxu3 %v1642_v8 }
  0xa4   : > { %562 = vmatmul.bf16.vlgmr.msra.gmra.mxu0 %v1634_v9  ;;  %572 = vmatmul.bf16.vlgmr.msra.gmra.mxu1 %v1636_v10 }
  0xa5   : > { %582 = vmatmul.bf16.vlgmr.msra.gmra.mxu2 %v1638_v11  ;;  %592 = vmatmul.bf16.vlgmr.msra.gmra.mxu3 %v1640_v12 }
  0xb4   : > { %567 = vmatmul.bf16.gmra.mxu0 %v1635_v13  ;;  %577 = vmatmul.bf16.gmra.mxu1 %v1637_v14 }
  0xb5   : > { %587 = vmatmul.bf16.gmra.mxu2 %v1639_v15  ;;  %597 = vmatmul.bf16.gmra.mxu3 %v1641_v16 }
 0x121   : > { %v563_v19 = vpop.f32.mrf.mxu0  ;;  %v573_v20 = vpop.f32.mrf.mxu1 }
 0x122   : > { %v603_v21 = vadd.f32 %v563_v19, %v406_v17  ;;  %v607_v22 = vadd.f32 %v573_v20, %v410_v18 }
 0x124   : > { %619 = vst [vmem:[#allocation3 + $0x30] sm:$0xff] %v603_v21 }
 0x125   : > { %623 = vst [vmem:[#allocation3 + $0x50] sm:$0xff] %v607_v22 }
 0x128   : > { %v583_v27 = vpop.f32.mrf.mxu2  ;;  %v593_v28 = vpop.f32.mrf.mxu3 }
 0x129   : > { %v611_v29 = vadd.f32 %v583_v27, %v414_v23  ;;  %v615_v30 = vadd.f32 %v593_v28, %v418_v24  ;;  %v565_v31 = vpop.f32.mrf.mxu0  ;;  %v575_v32 = vpop.f32.mrf.mxu1 }
 0x12a   : > { %v604_v33 = vadd.f32 %v565_v31, %v407_v25  ;;  %v608_v34 = vadd.f32 %v575_v32, %v411_v26 }
 0x12b   : > { %627 = vst [vmem:[#allocation3 + $0x40] sm:$0xff] %v611_v29 }
 0x12c   : > { %631 = vst [vmem:[#allocation3 + $0x60] sm:$0xff] %v615_v30 }
 0x12d   : > { %620 = vst [vmem:[#allocation3] sm:$0xff] %v604_v33 }
 0x12e   : > { %624 = vst [vmem:[#allocation3 + $0x68] sm:$0xff] %v608_v34 }
 0x130   : > { %v585_v39 = vpop.f32.mrf.mxu2  ;;  %v595_v40 = vpop.f32.mrf.mxu3 }
 0x131   : > { %v612_v41 = vadd.f32 %v585_v39, %v415_v35  ;;  %v616_v42 = vadd.f32 %v595_v40, %v419_v36  ;;  %v568_v43 = vpop.f32.mrf.mxu0  ;;  %v578_v44 = vpop.f32.mrf.mxu1 }
 0x132   : > { %v605_v45 = vadd.f32 %v568_v43, %v408_v37  ;;  %v609_v46 = vadd.f32 %v578_v44, %v412_v38 }
 0x133   : > { %628 = vst [vmem:[#allocation3 + $0x20] sm:$0xff] %v612_v41 }
 0x134   : > { %632 = vst [vmem:[#allocation3 + $0x70] sm:$0xff] %v616_v42 }
 0x135   : > { %621 = vst [vmem:[#allocation3 + $0x58] sm:$0xff] %v605_v45 }
 0x136   : > { %625 = vst [vmem:[#allocation3 + $0x8] sm:$0xff] %v609_v46 }
 0x138   : > { %v588_v51 = vpop.f32.mrf.mxu2  ;;  %v598_v52 = vpop.f32.mrf.mxu3 }
 0x139   : > { %v613_v53 = vadd.f32 %v588_v51, %v416_v47  ;;  %v617_v54 = vadd.f32 %v598_v52, %v420_v48  ;;  %v570_v55 = vpop.f32.mrf.mxu0  ;;  %v580_v56 = vpop.f32.mrf.mxu1 }
 0x13a   : > { %v606_v57 = vadd.f32 %v570_v55, %v409_v49  ;;  %v610_v58 = vadd.f32 %v580_v56, %v413_v50 }
 0x13b   : > { %629 = vst [vmem:[#allocation3 + $0x10] sm:$0xff] %v613_v53 }
 0x13c   : > { %633 = vst [vmem:[#allocation3 + $0x78] sm:$0xff] %v617_v54 }
 0x13d   : > { %622 = vst [vmem:[#allocation3 + $0x18] sm:$0xff] %v606_v57 }
 0x13e   : > { %626 = vst [vmem:[#allocation3 + $0x48] sm:$0xff] %v610_v58 }
 0x140   : > { %v590_v61 = vpop.f32.mrf.mxu2  ;;  %v600_v62 = vpop.f32.mrf.mxu3 }
 0x141   : > { %v614_v63 = vadd.f32 %v590_v61, %v417_v59  ;;  %v618_v0 = vadd.f32 %v600_v62, %v421_v60 }
 0x143   : > { %630 = vst [vmem:[#allocation3 + $0x38] sm:$0xff] %v614_v63 }
 0x144   : > { %634 = vst [vmem:[#allocation3 + $0x28] sm:$0xff] %v618_v0 }
 0x145 PF: > { %s2737_s22 = sld [smem:[#allocation22_spill]] }
 0x14b   : > { %p635_p2 = scmp.eq.s32.totalorder %s2737_s22, 1  ;;  %p1496_p4 = scmp.ne.s32.totalorder %s2737_s22, 1 }
 0x14c   : > { %s671_s8 = sshra.s32 (!%p1496_p4), %s1429_s5, 3 }
 0x14d   : > { %638 = sbr.rel (%p1496_p4) target bundleno = 531 (0x213), region = 76  ;;  %s1497_s16 = sshll.u32 (!%p1496_p4), %s671_s8, 2 }
 0x14e   : > { %s2531_s11 = scalar_lea.vmem (!%p1496_p4), [#allocation2], %s1497_s16 }
 0x152   : > { %v1665_v1 = vld [vmem:[%s2531_s11 + $0x38] sm:$0xff]  ;;  %v1664_v2 = vld [vmem:[%s2531_s11 + $0x30] sm:$0xff]  ;;  %v1663_v3 = vld [vmem:[%s2531_s11 + $0x28] sm:$0xff] }
 0x153   : > { %787 = vmatpush.bf16.msra.mxu0 %v1665_v1  ;;  %1754 = vmatpush.bf16.msra.mxu1 %v1665_v1  ;;  %v1662_v4 = vld [vmem:[%s2531_s11 + $0x20] sm:$0xff]  ;;  %v1661_v5 = vld [vmem:[%s2531_s11 + $0x18] sm:$0xff]  ;;  %v1660_v6 = vld [vmem:[%s2531_s11 + $0x10] sm:$0xff] }
 0x154   : > { %1755 = vmatpush.bf16.msra.mxu2 %v1665_v1  ;;  %1756 = vmatpush.bf16.msra.mxu3 %v1665_v1  ;;  %v1659_v7 = vld [vmem:[%s2531_s11 + $0x8] sm:$0xff]  ;;  %v1658_v8 = vld [vmem:[%s2531_s11] sm:$0xff]  ;;  %v1652_v10 = vld [vmem:[%s2484_s17 + $0x10] sm:$0xff] }
 0x155   : > { %v1650_v9 = vld [vmem:[%s2484_s17] sm:$0xff]  ;;  %v1656_v12 = vld [vmem:[%s2484_s17 + $0x30] sm:$0xff]  ;;  %v1651_v13 = vld [vmem:[%s2484_s17 + $0x8] sm:$0xff] }
 0x156   : > { %v1654_v11 = vld [vmem:[%s2484_s17 + $0x20] sm:$0xff]  ;;  %v1653_v14 = vld [vmem:[%s2484_s17 + $0x18] sm:$0xff]  ;;  %v1655_v15 = vld [vmem:[%s2484_s17 + $0x28] sm:$0xff] }
 0x157   : > { %788 = vmatpush.bf16.msra.mxu0 %v1664_v2  ;;  %1757 = vmatpush.bf16.msra.mxu1 %v1664_v2  ;;  %v1657_v16 = vld [vmem:[%s2484_s17 + $0x38] sm:$0xff]  ;;  %v639_v17 = vld [vmem:[#allocation3 + $0x30] sm:$0xff]  ;;  %v647_v23 = vld [vmem:[#allocation3 + $0x40] sm:$0xff] }
 0x158   : > { %1758 = vmatpush.bf16.msra.mxu2 %v1664_v2  ;;  %1759 = vmatpush.bf16.msra.mxu3 %v1664_v2  ;;  %v643_v18 = vld [vmem:[#allocation3 + $0x50] sm:$0xff]  ;;  %v651_v24 = vld [vmem:[#allocation3 + $0x60] sm:$0xff]  ;;  %v644_v26 = vld [vmem:[#allocation3 + $0x68] sm:$0xff] }
 0x159   : > { %v640_v25 = vld [vmem:[#allocation3] sm:$0xff]  ;;  %v652_v36 = vld [vmem:[#allocation3 + $0x70] sm:$0xff]  ;;  %v641_v37 = vld [vmem:[#allocation3 + $0x58] sm:$0xff] }
 0x15a   : > { %v648_v35 = vld [vmem:[#allocation3 + $0x20] sm:$0xff]  ;;  %v645_v38 = vld [vmem:[#allocation3 + $0x8] sm:$0xff]  ;;  %v649_v47 = vld [vmem:[#allocation3 + $0x10] sm:$0xff] }
 0x15b   : > { %789 = vmatpush.bf16.msra.mxu0 %v1663_v3  ;;  %1760 = vmatpush.bf16.msra.mxu1 %v1663_v3  ;;  %v653_v48 = vld [vmem:[#allocation3 + $0x78] sm:$0xff]  ;;  %v646_v50 = vld [vmem:[#allocation3 + $0x48] sm:$0xff] }
 0x15c   : > { %1761 = vmatpush.bf16.msra.mxu2 %v1663_v3  ;;  %1762 = vmatpush.bf16.msra.mxu3 %v1663_v3  ;;  %v642_v49 = vld [vmem:[#allocation3 + $0x18] sm:$0xff]  ;;  %v654_v60 = vld [vmem:[#allocation3 + $0x28] sm:$0xff] }
 0x15d   : > { %v650_v59 = vld [vmem:[#allocation3 + $0x38] sm:$0xff] }
 0x15f   : > { %790 = vmatpush.bf16.msra.mxu0 %v1662_v4  ;;  %1763 = vmatpush.bf16.msra.mxu1 %v1662_v4 }
 0x160   : > { %1764 = vmatpush.bf16.msra.mxu2 %v1662_v4  ;;  %1765 = vmatpush.bf16.msra.mxu3 %v1662_v4 }
 0x163   : > { %791 = vmatpush.bf16.msra.mxu0 %v1661_v5  ;;  %1766 = vmatpush.bf16.msra.mxu1 %v1661_v5 }
 0x164   : > { %1767 = vmatpush.bf16.msra.mxu2 %v1661_v5  ;;  %1768 = vmatpush.bf16.msra.mxu3 %v1661_v5 }
 0x167   : > { %792 = vmatpush.bf16.msra.mxu0 %v1660_v6  ;;  %1769 = vmatpush.bf16.msra.mxu1 %v1660_v6 }
 0x168   : > { %1770 = vmatpush.bf16.msra.mxu2 %v1660_v6  ;;  %1771 = vmatpush.bf16.msra.mxu3 %v1660_v6 }
 0x16b   : > { %793 = vmatpush.bf16.msra.mxu0 %v1659_v7  ;;  %1772 = vmatpush.bf16.msra.mxu1 %v1659_v7 }
 0x16c   : > { %1773 = vmatpush.bf16.msra.mxu2 %v1659_v7  ;;  %1774 = vmatpush.bf16.msra.mxu3 %v1659_v7 }
 0x16f   : > { %794 = vmatpush.bf16.msra.mxu0 %v1658_v8  ;;  %1775 = vmatpush.bf16.msra.mxu1 %v1658_v8 }
 0x170   : > { %1776 = vmatpush.bf16.msra.mxu2 %v1658_v8  ;;  %1777 = vmatpush.bf16.msra.mxu3 %v1658_v8 }
 0x172   : > { %795 = vmatmul.bf16.vlgmr.msra.gmra.mxu0 %v1650_v9  ;;  %805 = vmatmul.bf16.vlgmr.msra.gmra.mxu1 %v1652_v10 }
 0x173   : > { %815 = vmatmul.bf16.vlgmr.msra.gmra.mxu2 %v1654_v11  ;;  %825 = vmatmul.bf16.vlgmr.msra.gmra.mxu3 %v1656_v12 }
 0x182   : > { %800 = vmatmul.bf16.gmra.mxu0 %v1651_v13  ;;  %810 = vmatmul.bf16.gmra.mxu1 %v1653_v14 }
 0x183   : > { %820 = vmatmul.bf16.gmra.mxu2 %v1655_v15  ;;  %830 = vmatmul.bf16.gmra.mxu3 %v1657_v16 }
 0x1ef   : > { %v796_v19 = vpop.f32.mrf.mxu0  ;;  %v806_v20 = vpop.f32.mrf.mxu1 }
 0x1f0   : > { %v836_v21 = vadd.f32 %v796_v19, %v639_v17  ;;  %v840_v22 = vadd.f32 %v806_v20, %v643_v18 }
 0x1f2   : > { %852 = vst [vmem:[#allocation3 + $0x30] sm:$0xff] %v836_v21 }
 0x1f3   : > { %856 = vst [vmem:[#allocation3 + $0x50] sm:$0xff] %v840_v22 }
 0x1f6   : > { %v816_v27 = vpop.f32.mrf.mxu2  ;;  %v826_v28 = vpop.f32.mrf.mxu3 }
 0x1f7   : > { %v844_v29 = vadd.f32 %v816_v27, %v647_v23  ;;  %v848_v30 = vadd.f32 %v826_v28, %v651_v24  ;;  %v798_v31 = vpop.f32.mrf.mxu0  ;;  %v808_v32 = vpop.f32.mrf.mxu1 }
 0x1f8   : > { %v837_v33 = vadd.f32 %v798_v31, %v640_v25  ;;  %v841_v34 = vadd.f32 %v808_v32, %v644_v26 }
 0x1f9   : > { %860 = vst [vmem:[#allocation3 + $0x40] sm:$0xff] %v844_v29 }
 0x1fa   : > { %864 = vst [vmem:[#allocation3 + $0x60] sm:$0xff] %v848_v30 }
 0x1fb   : > { %853 = vst [vmem:[#allocation3] sm:$0xff] %v837_v33 }
 0x1fc   : > { %857 = vst [vmem:[#allocation3 + $0x68] sm:$0xff] %v841_v34 }
 0x1fe   : > { %v818_v39 = vpop.f32.mrf.mxu2  ;;  %v828_v40 = vpop.f32.mrf.mxu3 }
 0x1ff   : > { %v845_v41 = vadd.f32 %v818_v39, %v648_v35  ;;  %v849_v42 = vadd.f32 %v828_v40, %v652_v36  ;;  %v801_v43 = vpop.f32.mrf.mxu0  ;;  %v811_v44 = vpop.f32.mrf.mxu1 }
 0x200   : > { %v838_v45 = vadd.f32 %v801_v43, %v641_v37  ;;  %v842_v46 = vadd.f32 %v811_v44, %v645_v38 }
 0x201   : > { %861 = vst [vmem:[#allocation3 + $0x20] sm:$0xff] %v845_v41 }
 0x202   : > { %865 = vst [vmem:[#allocation3 + $0x70] sm:$0xff] %v849_v42 }
 0x203   : > { %854 = vst [vmem:[#allocation3 + $0x58] sm:$0xff] %v838_v45 }
 0x204   : > { %858 = vst [vmem:[#allocation3 + $0x8] sm:$0xff] %v842_v46 }
 0x206   : > { %v821_v51 = vpop.f32.mrf.mxu2  ;;  %v831_v52 = vpop.f32.mrf.mxu3 }
 0x207   : > { %v846_v53 = vadd.f32 %v821_v51, %v649_v47  ;;  %v850_v54 = vadd.f32 %v831_v52, %v653_v48  ;;  %v803_v55 = vpop.f32.mrf.mxu0  ;;  %v813_v56 = vpop.f32.mrf.mxu1 }
 0x208   : > { %v839_v57 = vadd.f32 %v803_v55, %v642_v49  ;;  %v843_v58 = vadd.f32 %v813_v56, %v646_v50 }
 0x209   : > { %862 = vst [vmem:[#allocation3 + $0x10] sm:$0xff] %v846_v53 }
 0x20a   : > { %866 = vst [vmem:[#allocation3 + $0x78] sm:$0xff] %v850_v54 }
 0x20b   : > { %855 = vst [vmem:[#allocation3 + $0x18] sm:$0xff] %v839_v57 }
 0x20c   : > { %859 = vst [vmem:[#allocation3 + $0x48] sm:$0xff] %v843_v58 }
 0x20e   : > { %v823_v61 = vpop.f32.mrf.mxu2  ;;  %v833_v62 = vpop.f32.mrf.mxu3 }
 0x20f   : > { %v847_v63 = vadd.f32 %v823_v61, %v650_v59  ;;  %v851_v0 = vadd.f32 %v833_v62, %v654_v60 }
 0x211   : > { %863 = vst [vmem:[#allocation3 + $0x38] sm:$0xff] %v847_v63 }
 0x212   : > { %867 = vst [vmem:[#allocation3 + $0x28] sm:$0xff] %v851_v0 }
 0x213 PF: > { %s2739_s14 = sld [smem:[#allocation20_spill]] }
 0x219   : > { %p868_p5 = scmp.eq.s32.totalorder %s2739_s14, 1 }
 0x21b   : > { %p869_p6 = pnand %p868_p5, %p402_p1 }
 0x21c   : > { %s2741_s9 = sld [smem:[#allocation30_spill]] (!%p869_p6) }
 0x21d   : > { %872 = sbr.rel (%p869_p6) target bundleno = 739 (0x2e3), region = 80  ;;  %s2742_s19 = sld [smem:[#allocation21_spill]] (!%p869_p6) }
 0x222   : > { %v1673_v1 = vld [vmem:[#allocation9 + $0x38] sm:$0xff]  ;;  %v1672_v2 = vld [vmem:[#allocation9 + $0x30] sm:$0xff]  ;;  %v1671_v3 = vld [vmem:[#allocation9 + $0x28] sm:$0xff] }
 0x223   : > { %998 = vmatpush.bf16.msra.mxu0 %v1673_v1  ;;  %1778 = vmatpush.bf16.msra.mxu1 %v1673_v1  ;;  %v1670_v4 = vld [vmem:[#allocation9 + $0x20] sm:$0xff]  ;;  %v1669_v5 = vld [vmem:[#allocation9 + $0x18] sm:$0xff]  ;;  %v1668_v7 = vld [vmem:[#allocation9 + $0x10] sm:$0xff]  ;;  %s1562_s23 = sshll.u32 %s2742_s19, 7 }
 0x224   : > { %1779 = vmatpush.bf16.msra.mxu2 %v1673_v1  ;;  %1780 = vmatpush.bf16.msra.mxu3 %v1673_v1  ;;  %v2557_v6 = vld [vmem:[%s2741_s9] ss:$0 sm:$0xff]  ;;  %v873_v8 = vld [vmem:[#allocation3 + $0x30] sm:$0xff]  ;;  %v878_v11 = vld [vmem:[#allocation3 + $0x68] sm:$0xff]  ;;  %s1063_s15 = sshra.s32 %s1562_s23, 3 }
 0x225   : > { %v874_v9 = vld [vmem:[#allocation3] sm:$0xff]  ;;  %v877_v10 = vld [vmem:[#allocation3 + $0x50] sm:$0xff]  ;;  %v893_v16 = vadd.f32 %v2557_v6, %v873_v8  ;;  %v898_v19 = vadd.f32 %v2557_v6, %v878_v11  ;;  %v1667_v21 = vld [vmem:[#allocation9 + $0x8] sm:$0xff]  ;;  %s1595_s1 = sshll.u32 %s1063_s15, 2 }
 0x226   : > { %v881_v12 = vld [vmem:[#allocation3 + $0x40] sm:$0xff]  ;;  %v886_v15 = vld [vmem:[#allocation3 + $0x70] sm:$0xff]  ;;  %v894_v17 = vadd.f32 %v2557_v6, %v874_v9  ;;  %v897_v18 = vadd.f32 %v2557_v6, %v877_v10  ;;  %v875_v38 = vld [vmem:[#allocation3 + $0x58] sm:$0xff]  ;;  %s1066_s5 = scalar_lea.vmem [#allocation2], %s1595_s1 }
 0x227   : > { %999 = vmatpush.bf16.msra.mxu0 %v1672_v2  ;;  %1781 = vmatpush.bf16.msra.mxu1 %v1672_v2  ;;  %v882_v13 = vld [vmem:[#allocation3 + $0x20] sm:$0xff]  ;;  %v901_v20 = vadd.f32 %v2557_v6, %v881_v12  ;;  %v906_v24 = vadd.f32 %v2557_v6, %v886_v15  ;;  %v909_v25 = vmax.f32 %v893_v16, 0.0  ;;  %v914_v28 = vmax.f32 %v898_v19, 0.0  ;;  %v876_v39 = vld [vmem:[#allocation3 + $0x18] sm:$0xff]  ;;  %v879_v40 = vld [vmem:[#allocation3 + $0x8] sm:$0xff] }
 0x228   : > { %1782 = vmatpush.bf16.msra.mxu2 %v1672_v2  ;;  %1783 = vmatpush.bf16.msra.mxu3 %v1672_v2  ;;  %v885_v14 = vld [vmem:[#allocation3 + $0x60] sm:$0xff]  ;;  %v902_v22 = vadd.f32 %v2557_v6, %v882_v13  ;;  %v910_v26 = vmax.f32 %v894_v17, 0.0  ;;  %v913_v27 = vmax.f32 %v897_v18, 0.0  ;;  %v880_v41 = vld [vmem:[#allocation3 + $0x48] sm:$0xff]  ;;  %v883_v42 = vld [vmem:[#allocation3 + $0x10] sm:$0xff]  ;;  %v895_v46 = vadd.f32 %v2557_v6, %v875_v38 }
 0x229   : > { %v905_v23 = vadd.f32 %v2557_v6, %v885_v14  ;;  %v1666_v29 = vld [vmem:[#allocation9] sm:$0xff]  ;;  %v917_v30 = vmax.f32 %v901_v20, 0.0  ;;  %v922_v33 = vmax.f32 %v906_v24, 0.0  ;;  %v884_v43 = vld [vmem:[#allocation3 + $0x38] sm:$0xff]  ;;  %v888_v45 = vld [vmem:[#allocation3 + $0x28] sm:$0xff]  ;;  %v896_v47 = vadd.f32 %v2557_v6, %v876_v39 }
 0x22a   : > { %v918_v31 = vmax.f32 %v902_v22, 0.0  ;;  %v926_v34 = vpack.c.bf16 %v910_v26, %v909_v25  ;;  %v928_v35 = vpack.c.bf16 %v914_v28, %v913_v27  ;;  %v887_v44 = vld [vmem:[#allocation3 + $0x78] sm:$0xff]  ;;  %v899_v48 = vadd.f32 %v2557_v6, %v879_v40 }
 0x22b   : > { %1000 = vmatpush.bf16.msra.mxu0 %v1671_v3  ;;  %1784 = vmatpush.bf16.msra.mxu1 %v1671_v3  ;;  %v921_v32 = vmax.f32 %v905_v23, 0.0  ;;  %v900_v49 = vadd.f32 %v2557_v6, %v880_v41  ;;  %v903_v50 = vadd.f32 %v2557_v6, %v883_v42  ;;  %v904_v51 = vadd.f32 %v2557_v6, %v884_v43 }
 0x22c   : > { %1785 = vmatpush.bf16.msra.mxu2 %v1671_v3  ;;  %1786 = vmatpush.bf16.msra.mxu3 %v1671_v3  ;;  %v930_v36 = vpack.c.bf16 %v918_v31, %v917_v30  ;;  %v907_v52 = vadd.f32 %v2557_v6, %v887_v44  ;;  %v908_v53 = vadd.f32 %v2557_v6, %v888_v45  ;;  %v911_v54 = vmax.f32 %v895_v46, 0.0 }
 0x22d   : > { %v932_v37 = vpack.c.bf16 %v922_v33, %v921_v32  ;;  %v912_v55 = vmax.f32 %v896_v47, 0.0  ;;  %v915_v56 = vmax.f32 %v899_v48, 0.0  ;;  %v916_v57 = vmax.f32 %v900_v49, 0.0 }
 0x22e   : > { %v919_v58 = vmax.f32 %v903_v50, 0.0  ;;  %v920_v59 = vmax.f32 %v904_v51, 0.0  ;;  %v923_v60 = vmax.f32 %v907_v52, 0.0  ;;  %v924_v61 = vmax.f32 %v908_v53, 0.0 }
 0x22f   : > { %1001 = vmatpush.bf16.msra.mxu0 %v1670_v4  ;;  %1787 = vmatpush.bf16.msra.mxu1 %v1670_v4  ;;  %v927_v62 = vpack.c.bf16 %v912_v55, %v911_v54  ;;  %v929_v63 = vpack.c.bf16 %v916_v57, %v915_v56 }
 0x230   : > { %1788 = vmatpush.bf16.msra.mxu2 %v1670_v4  ;;  %1789 = vmatpush.bf16.msra.mxu3 %v1670_v4  ;;  %v931_v0 = vpack.c.bf16 %v920_v59, %v919_v58  ;;  %v933_v1 = vpack.c.bf16 %v924_v61, %v923_v60 }
 0x233   : > { %1002 = vmatpush.bf16.msra.mxu0 %v1669_v5  ;;  %1790 = vmatpush.bf16.msra.mxu1 %v1669_v5 }
 0x234   : > { %1791 = vmatpush.bf16.msra.mxu2 %v1669_v5  ;;  %1792 = vmatpush.bf16.msra.mxu3 %v1669_v5 }
 0x237   : > { %1003 = vmatpush.bf16.msra.mxu0 %v1668_v7  ;;  %1793 = vmatpush.bf16.msra.mxu1 %v1668_v7 }
 0x238   : > { %1794 = vmatpush.bf16.msra.mxu2 %v1668_v7  ;;  %1795 = vmatpush.bf16.msra.mxu3 %v1668_v7 }
 0x23b   : > { %1004 = vmatpush.bf16.msra.mxu0 %v1667_v21  ;;  %1796 = vmatpush.bf16.msra.mxu1 %v1667_v21 }
 0x23c   : > { %1797 = vmatpush.bf16.msra.mxu2 %v1667_v21  ;;  %1798 = vmatpush.bf16.msra.mxu3 %v1667_v21 }
 0x23f   : > { %1005 = vmatpush.bf16.msra.mxu0 %v1666_v29  ;;  %1799 = vmatpush.bf16.msra.mxu1 %v1666_v29 }
 0x240   : > { %1800 = vmatpush.bf16.msra.mxu2 %v1666_v29  ;;  %1801 = vmatpush.bf16.msra.mxu3 %v1666_v29 }
 0x242   : > { %1006 = vmatmul.bf16.vlgmr.msra.gmra.mxu0 %v926_v34  ;;  %1016 = vmatmul.bf16.vlgmr.msra.gmra.mxu1 %v928_v35 }
 0x243   : > { %1026 = vmatmul.bf16.vlgmr.msra.gmra.mxu2 %v930_v36  ;;  %1036 = vmatmul.bf16.vlgmr.msra.gmra.mxu3 %v932_v37 }
 0x252   : > { %1011 = vmatmul.bf16.gmra.mxu0 %v927_v62  ;;  %1021 = vmatmul.bf16.gmra.mxu1 %v929_v63 }
 0x253   : > { %1031 = vmatmul.bf16.gmra.mxu2 %v931_v0  ;;  %1041 = vmatmul.bf16.gmra.mxu3 %v933_v1 }
 0x2bf   : > { %v1007_v2 = vpop.f32.mrf.mxu0  ;;  %v1017_v3 = vpop.f32.mrf.mxu1 }
 0x2c6   : > { %v1027_v4 = vpop.f32.mrf.mxu2  ;;  %v1037_v5 = vpop.f32.mrf.mxu3 }
 0x2c7   : > { %v1009_v6 = vpop.f32.mrf.mxu0  ;;  %v1019_v7 = vpop.f32.mrf.mxu1 }
 0x2c8   : > { %v1686_v8 = vpack.c.bf16 %v1009_v6, %v1007_v2  ;;  %v1696_v9 = vpack.c.bf16 %v1019_v7, %v1017_v3 }
 0x2ca   : > { %1687 = vst [vmem:[%s1066_s5] sm:$0xff] %v1686_v8  }
 0x2cb   : > { %1724 = vst [vmem:[%s1066_s5 + $0x10] sm:$0xff] %v1696_v9  }
 0x2ce   : > { %v1029_v10 = vpop.f32.mrf.mxu2  ;;  %v1039_v11 = vpop.f32.mrf.mxu3 }
 0x2cf   : > { %v1706_v12 = vpack.c.bf16 %v1029_v10, %v1027_v4  ;;  %v1716_v13 = vpack.c.bf16 %v1039_v11, %v1037_v5  ;;  %v1012_v14 = vpop.f32.mrf.mxu0  ;;  %v1022_v15 = vpop.f32.mrf.mxu1 }
 0x2d1   : > { %1726 = vst [vmem:[%s1066_s5 + $0x20] sm:$0xff] %v1706_v12  }
 0x2d2   : > { %1728 = vst [vmem:[%s1066_s5 + $0x30] sm:$0xff] %v1716_v13  }
 0x2d6   : > { %v1032_v16 = vpop.f32.mrf.mxu2  ;;  %v1042_v17 = vpop.f32.mrf.mxu3 }
 0x2d7   : > { %v1014_v18 = vpop.f32.mrf.mxu0  ;;  %v1024_v19 = vpop.f32.mrf.mxu1 }
 0x2d8   : > { %v1691_v20 = vpack.c.bf16 %v1014_v18, %v1012_v14  ;;  %v1701_v21 = vpack.c.bf16 %v1024_v19, %v1022_v15 }
 0x2da   : > { %1723 = vst [vmem:[%s1066_s5 + $0x8] sm:$0xff] %v1691_v20  }
 0x2db   : > { %1725 = vst [vmem:[%s1066_s5 + $0x18] sm:$0xff] %v1701_v21  }
 0x2de   : > { %v1034_v22 = vpop.f32.mrf.mxu2  ;;  %v1044_v23 = vpop.f32.mrf.mxu3 }
 0x2df   : > { %v1711_v24 = vpack.c.bf16 %v1034_v22, %v1032_v16  ;;  %v1721_v25 = vpack.c.bf16 %v1044_v23, %v1042_v17 }
 0x2e1   : > { %1727 = vst [vmem:[%s1066_s5 + $0x28] sm:$0xff] %v1711_v24  }
 0x2e2   : > { %1729 = vst [vmem:[%s1066_s5 + $0x38] sm:$0xff] %v1721_v25  }
 0x2e3 PF: > { %p1083_p8 = pnand %p868_p5, %p635_p2 }
 0x2e4   : > { %s2745_s22 = sld [smem:[#allocation32_spill]] (!%p1083_p8) }
 0x2e5   : > { %1086 = sbr.rel (%p1083_p8) target bundleno = 971 (0x3cb), region = 84  ;;  %s2746_s16 = sld [smem:[#allocation34_spill]] (!%p1083_p8) }
 0x2ea   : > { %v1681_v26 = vld [vmem:[#allocation10 + $0x38] sm:$0xff]  ;;  %v1680_v27 = vld [vmem:[#allocation10 + $0x30] sm:$0xff]  ;;  %v1679_v28 = vld [vmem:[#allocation10 + $0x28] sm:$0xff] }
 0x2eb   : > { %1199 = vmatpush.bf16.xpose.msra.mxu0 %v1681_v26  ;;  %1802 = vmatpush.bf16.xpose.msra.mxu1 %v1681_v26  ;;  %v1678_v29 = vld [vmem:[#allocation10 + $0x20] sm:$0xff]  ;;  %v1677_v30 = vld [vmem:[#allocation10 + $0x18] sm:$0xff]  ;;  %v1676_v31 = vld [vmem:[#allocation10 + $0x10] sm:$0xff] }
 0x2ec   : > { %1803 = vmatpush.bf16.xpose.msra.mxu2 %v1681_v26  ;;  %1804 = vmatpush.bf16.xpose.msra.mxu3 %v1681_v26  ;;  %v1675_v32 = vld [vmem:[#allocation10 + $0x8] sm:$0xff]  ;;  %v1982_v33 = vld [vmem:[%s2745_s22] ss:$0 sm:$0xff]  ;;  %v1087_v35 = vld [vmem:[#allocation3 + $0x30] sm:$0xff] }
 0x2ed   : > { %v1674_v34 = vld [vmem:[#allocation10] sm:$0xff]  ;;  %v1091_v37 = vld [vmem:[#allocation3 + $0x50] sm:$0xff]  ;;  %v1092_v38 = vld [vmem:[#allocation3 + $0x68] sm:$0xff]  ;;  %v1107_v43 = vadd.f32 %v1982_v33, %v1087_v35 }
 0x2ee   : > { %v1088_v36 = vld [vmem:[#allocation3] sm:$0xff]  ;;  %v1100_v42 = vld [vmem:[#allocation3 + $0x70] sm:$0xff]  ;;  %v1111_v45 = vadd.f32 %v1982_v33, %v1091_v37  ;;  %v1112_v46 = vadd.f32 %v1982_v33, %v1092_v38  ;;  %v1089_v55 = vld [vmem:[#allocation3 + $0x58] sm:$0xff] }
 0x2ef   : > { %v1095_v39 = vld [vmem:[#allocation3 + $0x40] sm:$0xff]  ;;  %v1108_v44 = vadd.f32 %v1982_v33, %v1088_v36  ;;  %v1120_v50 = vadd.f32 %v1982_v33, %v1100_v42  ;;  %v1090_v56 = vld [vmem:[#allocation3 + $0x18] sm:$0xff]  ;;  %v1093_v57 = vld [vmem:[#allocation3 + $0x8] sm:$0xff]  ;;  %v1109_v63 = vadd.f32 %v1982_v33, %v1089_v55 }
 0x2f0   : > { %v1096_v40 = vld [vmem:[#allocation3 + $0x20] sm:$0xff]  ;;  %v1115_v47 = vadd.f32 %v1982_v33, %v1095_v39  ;;  %v1125_v52 = vpack.c.bf16 %v1112_v46, %v1111_v45  ;;  %v1094_v58 = vld [vmem:[#allocation3 + $0x48] sm:$0xff]  ;;  %v1097_v59 = vld [vmem:[#allocation3 + $0x10] sm:$0xff]  ;;  %v1110_v0 = vadd.f32 %v1982_v33, %v1090_v56  ;;  %v1113_v1 = vadd.f32 %v1982_v33, %v1093_v57 }
 0x2f1   : > { %v1099_v41 = vld [vmem:[#allocation3 + $0x60] sm:$0xff]  ;;  %v1116_v48 = vadd.f32 %v1982_v33, %v1096_v40  ;;  %v1123_v51 = vpack.c.bf16 %v1108_v44, %v1107_v43  ;;  %v1098_v60 = vld [vmem:[#allocation3 + $0x38] sm:$0xff]  ;;  %v1102_v62 = vld [vmem:[#allocation3 + $0x28] sm:$0xff]  ;;  %v1114_v2 = vadd.f32 %v1982_v33, %v1094_v58  ;;  %v1117_v3 = vadd.f32 %v1982_v33, %v1097_v59 }
 0x2f2   : > { %v1119_v49 = vadd.f32 %v1982_v33, %v1099_v41  ;;  %v1101_v61 = vld [vmem:[#allocation3 + $0x78] sm:$0xff]  ;;  %v1118_v4 = vadd.f32 %v1982_v33, %v1098_v60  ;;  %v1122_v6 = vadd.f32 %v1982_v33, %v1102_v62  ;;  %v1124_v7 = vpack.c.bf16 %v1110_v0, %v1109_v63  ;;  %v1983_v11 = vld [vmem:[%s2746_s16] ss:$0 sm:$0xff] }
 0x2f3   : > { %1200 = vmatpush.bf16.xpose.msra.mxu0 %v1680_v27  ;;  %1805 = vmatpush.bf16.xpose.msra.mxu1 %v1680_v27  ;;  %v1127_v53 = vpack.c.bf16 %v1116_v48, %v1115_v47  ;;  %v1121_v5 = vadd.f32 %v1982_v33, %v1101_v61  ;;  %v1126_v8 = vpack.c.bf16 %v1114_v2, %v1113_v1 }
 0x2f4   : > { %1806 = vmatpush.bf16.xpose.msra.mxu2 %v1680_v27  ;;  %1807 = vmatpush.bf16.xpose.msra.mxu3 %v1680_v27  ;;  %v1129_v54 = vpack.c.bf16 %v1120_v50, %v1119_v49  ;;  %v1128_v9 = vpack.c.bf16 %v1118_v4, %v1117_v3 }
 0x2f5   : > { %v1130_v10 = vpack.c.bf16 %v1122_v6, %v1121_v5 }
 0x2fb   : > { %1201 = vmatpush.bf16.xpose.msra.mxu0 %v1679_v28  ;;  %1808 = vmatpush.bf16.xpose.msra.mxu1 %v1679_v28 }
 0x2fc   : > { %1809 = vmatpush.bf16.xpose.msra.mxu2 %v1679_v28  ;;  %1810 = vmatpush.bf16.xpose.msra.mxu3 %v1679_v28 }
 0x303   : > { %1202 = vmatpush.bf16.xpose.msra.mxu0 %v1678_v29  ;;  %1811 = vmatpush.bf16.xpose.msra.mxu1 %v1678_v29 }
 0x304   : > { %1812 = vmatpush.bf16.xpose.msra.mxu2 %v1678_v29  ;;  %1813 = vmatpush.bf16.xpose.msra.mxu3 %v1678_v29 }
 0x30b   : > { %1203 = vmatpush.bf16.xpose.msra.mxu0 %v1677_v30  ;;  %1814 = vmatpush.bf16.xpose.msra.mxu1 %v1677_v30 }
 0x30c   : > { %1815 = vmatpush.bf16.xpose.msra.mxu2 %v1677_v30  ;;  %1816 = vmatpush.bf16.xpose.msra.mxu3 %v1677_v30 }
 0x313   : > { %1204 = vmatpush.bf16.xpose.msra.mxu0 %v1676_v31  ;;  %1817 = vmatpush.bf16.xpose.msra.mxu1 %v1676_v31 }
 0x314   : > { %1818 = vmatpush.bf16.xpose.msra.mxu2 %v1676_v31  ;;  %1819 = vmatpush.bf16.xpose.msra.mxu3 %v1676_v31 }
 0x31b   : > { %1205 = vmatpush.bf16.xpose.msra.mxu0 %v1675_v32  ;;  %1820 = vmatpush.bf16.xpose.msra.mxu1 %v1675_v32 }
 0x31c   : > { %1821 = vmatpush.bf16.xpose.msra.mxu2 %v1675_v32  ;;  %1822 = vmatpush.bf16.xpose.msra.mxu3 %v1675_v32 }
 0x323   : > { %1206 = vmatpush.bf16.xpose.msra.mxu0 %v1674_v34  ;;  %1823 = vmatpush.bf16.xpose.msra.mxu1 %v1674_v34 }
 0x324   : > { %1824 = vmatpush.bf16.xpose.msra.mxu2 %v1674_v34  ;;  %1825 = vmatpush.bf16.xpose.msra.mxu3 %v1674_v34 }
 0x32a   : > { %1207 = vmatmul.bf16.vlgmr.msra.gmra.mxu0 %v1123_v51  ;;  %1217 = vmatmul.bf16.vlgmr.msra.gmra.mxu1 %v1125_v52 }
 0x32b   : > { %1227 = vmatmul.bf16.vlgmr.msra.gmra.mxu2 %v1127_v53  ;;  %1237 = vmatmul.bf16.vlgmr.msra.gmra.mxu3 %v1129_v54 }
 0x33a   : > { %1212 = vmatmul.bf16.gmra.mxu0 %v1124_v7  ;;  %1222 = vmatmul.bf16.gmra.mxu1 %v1126_v8 }
 0x33b   : > { %1232 = vmatmul.bf16.gmra.mxu2 %v1128_v9  ;;  %1242 = vmatmul.bf16.gmra.mxu3 %v1130_v10 }
 0x3a7   : > { %v1208_v12 = vpop.f32.mrf.mxu0  ;;  %v1218_v13 = vpop.f32.mrf.mxu1 }
 0x3a8   : > { %v1209_v14 = vadd.f32 %v1983_v11, %v1208_v12  ;;  %v1219_v15 = vadd.f32 %v1983_v11, %v1218_v13 }
 0x3aa   : > { %1248 = vst [vmem:[%s2501_s21] sm:$0xff] %v1209_v14 }
 0x3ab   : > { %1252 = vst [vmem:[%s2501_s21 + $0x20] sm:$0xff] %v1219_v15 }
 0x3ae   : > { %v1228_v16 = vpop.f32.mrf.mxu2  ;;  %v1238_v17 = vpop.f32.mrf.mxu3 }
 0x3af   : > { %v1229_v18 = vadd.f32 %v1983_v11, %v1228_v16  ;;  %v1239_v19 = vadd.f32 %v1983_v11, %v1238_v17  ;;  %v1210_v20 = vpop.f32.mrf.mxu0  ;;  %v1220_v21 = vpop.f32.mrf.mxu1 }
 0x3b0   : > { %v1211_v22 = vadd.f32 %v1983_v11, %v1210_v20  ;;  %v1221_v23 = vadd.f32 %v1983_v11, %v1220_v21 }
 0x3b1   : > { %1256 = vst [vmem:[%s2501_s21 + $0x40] sm:$0xff] %v1229_v18 }
 0x3b2   : > { %1260 = vst [vmem:[%s2501_s21 + $0x60] sm:$0xff] %v1239_v19 }
 0x3b3   : > { %1249 = vst [vmem:[%s2501_s21 + $0x8] sm:$0xff] %v1211_v22 }
 0x3b4   : > { %1253 = vst [vmem:[%s2501_s21 + $0x28] sm:$0xff] %v1221_v23 }
 0x3b6   : > { %v1230_v24 = vpop.f32.mrf.mxu2  ;;  %v1240_v25 = vpop.f32.mrf.mxu3 }
 0x3b7   : > { %v1231_v26 = vadd.f32 %v1983_v11, %v1230_v24  ;;  %v1241_v27 = vadd.f32 %v1983_v11, %v1240_v25  ;;  %v1213_v28 = vpop.f32.mrf.mxu0  ;;  %v1223_v29 = vpop.f32.mrf.mxu1 }
 0x3b8   : > { %v1214_v30 = vadd.f32 %v1983_v11, %v1213_v28  ;;  %v1224_v31 = vadd.f32 %v1983_v11, %v1223_v29 }
 0x3b9   : > { %1257 = vst [vmem:[%s2501_s21 + $0x48] sm:$0xff] %v1231_v26 }
 0x3ba   : > { %1261 = vst [vmem:[%s2501_s21 + $0x68] sm:$0xff] %v1241_v27 }
 0x3bb   : > { %1250 = vst [vmem:[%s2501_s21 + $0x10] sm:$0xff] %v1214_v30 }
 0x3bc   : > { %1254 = vst [vmem:[%s2501_s21 + $0x30] sm:$0xff] %v1224_v31 }
 0x3be   : > { %v1233_v32 = vpop.f32.mrf.mxu2  ;;  %v1243_v33 = vpop.f32.mrf.mxu3 }
 0x3bf   : > { %v1234_v34 = vadd.f32 %v1983_v11, %v1233_v32  ;;  %v1244_v35 = vadd.f32 %v1983_v11, %v1243_v33  ;;  %v1215_v36 = vpop.f32.mrf.mxu0  ;;  %v1225_v37 = vpop.f32.mrf.mxu1 }
 0x3c0   : > { %v1216_v38 = vadd.f32 %v1983_v11, %v1215_v36  ;;  %v1226_v39 = vadd.f32 %v1983_v11, %v1225_v37 }
 0x3c1   : > { %1258 = vst [vmem:[%s2501_s21 + $0x50] sm:$0xff] %v1234_v34 }
 0x3c2   : > { %1262 = vst [vmem:[%s2501_s21 + $0x70] sm:$0xff] %v1244_v35 }
 0x3c3   : > { %1251 = vst [vmem:[%s2501_s21 + $0x18] sm:$0xff] %v1216_v38 }
 0x3c4   : > { %1255 = vst [vmem:[%s2501_s21 + $0x38] sm:$0xff] %v1226_v39 }
 0x3c6   : > { %v1235_v40 = vpop.f32.mrf.mxu2  ;;  %v1245_v41 = vpop.f32.mrf.mxu3 }
 0x3c7   : > { %v1236_v42 = vadd.f32 %v1983_v11, %v1235_v40  ;;  %v1246_v43 = vadd.f32 %v1983_v11, %v1245_v41 }
 0x3c9   : > { %1259 = vst [vmem:[%s2501_s21 + $0x58] sm:$0xff] %v1236_v42 }
 0x3ca   : > { %1263 = vst [vmem:[%s2501_s21 + $0x78] sm:$0xff] %v1246_v43 }
 0x3cb PF: > { %s2747_s11 = sld [smem:[#allocation22_spill]]  ;;  %s1278_s9 = sshll.u32 %s2501_s21, 4  ;;  %s1279_s9 = int_to_ptr.vmem [resolvable:$true] %s1278_s9 }
 0x3cc   : > { %s2748_s14 = sld [smem:[#allocation21_spill]]  ;;  %s1265_s4 = scalar_lea.sflag [#allocation6], %s375_s27 }
 0x3cd   : > { %s2751_s1 = sld [smem:[#allocation35_spill]] }
 0x3d2   : > { %s1272_s28 = smul.u32 %s2748_s14, %s2747_s11 }
 0x3d3   : > { %s2124_s21 = scalar_lea.hbm %s2751_s1, 256 }
 0x3d4   : > { %s1682_s19 = sshll.u32 %s1272_s28, 7 }
 0x3d5   : > { %s1277_s5 = scalar_lea.hbm %s2751_s1, %s1682_s19 }
 0x3d6   : > { %s1280_s3 = sshll.u32 %s1277_s5, 4  ;;  %s1281_s3 = int_to_ptr.hbm [resolvable:$true] %s1280_s3 }
 0x3d7   : > { %s2118_s6 = sshra.s32 %s1281_s3, 4  ;;  %s2119_s6 = int_to_ptr.hbm [resolvable:$true] %s2118_s6 }
 0x3d8   : > { %s2120_s2 = scalar_lea.hbm %s2119_s6, 128  ;;  %p2125_p0 = scmp.lt.s32.totalorder %s2119_s6, %s2751_s1 }
 0x3d9   : > { %p2121_p10 = scmp.ne.s32.totalorder %s2119_s6, %s2120_s2  ;;  %p2126_p3 = scmp.lt.s32.totalorder %s2124_s21, %s2120_s2 }
 0x3db   : > { %p2122_p12 = pnand %p2121_p10, %p2382_p7  ;;  %p2127_p1 = por %p2126_p3, %p2125_p0 }
 0x3dd   : > { %p2123_p13 = pneg %p2122_p12 }
 0x3df   : > { %p2128_p11 = pnand %p2127_p1, %p2123_p13 }
 0x3e1   : > { %2131 = shalt.err (!%p2128_p11)
}
 0x3e2   : > { %s2259_s27 = smov 128   ;;  %s2260_s11 = smov 8  }
 0x3e3   : > { %1840 = dma.vmem_to_hbm [thread:$0]  (%p2382_p7), %s1279_s9, 2048, %s1281_s3, %s1265_s4, %s2259_s27, %s2259_s27, %s2260_s11  }
 0x3e4 PF: > { %s2752_s14 = sld [smem:[#allocation17_spill]]  ;;  %p1867_p2 = scmp.ge.s32.totalorder %s2250_s13, 2 }
 0x3e6   : > { %p1857_p4 = pnand %p1867_p2, %p2387_p9 }
 0x3e8   : > { %p1858_p5 = pneg %p1857_p4 }
 0x3ea   : > { %s1295_s28 = sand.u32 1, %s2752_s14  }
 0x3eb   : > { %s1296_s19 = scalar_lea.sflag [#allocation6], %s1295_s28 }
 0x3ec   : > { %2197 = dma.done.wait (%p1858_p5), %s1296_s19, 2048  }
 0x3ed   : > { %2199 = vsyncadd (%p1858_p5), %s1296_s19, 4294965248  ;;  %s25_s13 = sadd.s32 1, %s2250_s13   ;;  %s2755_s17 = sld [smem:[#allocation18_spill]] }
 0x3ee   : > { %p2625_p6 = scmp.ge.s32.totalorder %s25_s13, 10   ;;  %s2756_s27 = sld [smem:[#allocation19_spill]] }
 0x3ef   : > { %s2757_s9 = smov %s2465_s25  ;;  %s2758_s8 = sld [smem:[#allocation23_spill]] }
 0x3f0   : > { %s2759_s15 = sld [smem:[#allocation28_spill]]  ;;  %s2760_s5 = smov %s2776_s24 }
 0x3f1   : > { %s2762_s25 = smov %s2210_s26  ;;  %s2763_s26 = smov %s2470_s18 }
 0x3f2   : > { %s2764_s28 = smov %s2222_s29  ;;  %s2765_s29 = smov %s2757_s9 }
 0x3f3   : > { %s2761_s24 = smov %s2755_s17  ;;  %s2766_s30 = smov %s2238_s10 }
 0x3f4   : > { %s2767_s9 = smov %s2246_s12  ;;  %s2769_s11 = smov %s2760_s5 }
 0x3f5   : > { %s2770_s12 = smov %s2780_s20  ;;  %24 = sbr.rel (!%p2625_p6) target bundleno = 20 (0x14), region = 128 }
 0x3f6   : > { %s2768_s10 = smov %s2759_s15 }
 0x3fa   :  { %1302 = vsyncpa [#allocation5], 1 }
 0x3fb   :  { %1304 = vsyncpa [#allocation5 + $0x1], 1 }
 0x3fc   :  { %1305 = vsyncpa [#allocation8], 1 }
 0x3fd   :  { %1306 = vsyncpa [#allocation11], 1 }
 0x3fe   :  { %1307 = vsyncpa [#allocation6], 1 }
 0x3ff   :  { %1309 = vsyncpa [#allocation6 + $0x1], 1 }

</bundles_post_ra>
